<compile_context>
chip_gen: v7x
topology: tpu7x:2x2x1
jax: 0.10.0
libtpu: 0.0.40
codegen_flags: <defaults>
</compile_context>

<pallas_src>
import jax
import jax.numpy as jnp
from jax.experimental import pallas as pl
from jax.experimental.pallas import tpu as pltpu

# ---- hyperparameters (small, consistent with the module's forward) ----
VOCAB_SIZE = 50           # len(vocab_to_int)
HASHTAG_VOCAB_SIZE = 10   # len(hashtags_vocab_to_int) -- decision layer (never used in forward)
HIDDEN = 32               # hidden_size
EMBED = 2 * HIDDEN        # embed_size; forward feeds the 2*hidden bi-GRU output into
                          # Conv1d(embed_size, ...), so embed_size must equal 2*hidden_size.
BATCH = 2
SEQ = 8
KERNEL = 3


def cnn_rnn_fused_kernel(ids_ref,                    # (B*T,) int32 token ids   [SMEM]
                         emb_ref,                    # (V, 1, E) f32 embed table
                         w_in_ref, b_in_ref,         # (2E, 6H) bf16, (1, 6H) f32 (hh r/z biases folded)
                         w_hh_ref, b_hn_ref,         # (2H, 6H) bf16, (1, 2H) f32 (n-gate hh bias)
                         w_conv_ref, b_conv_ref,     # (K*4H, H) bf16, (1, H) f32
                         pool_ref,                   # (B, H) f32 output
                         xc_ref, gi_ref,             # scratch (T*B, 2E) f32, (T*B, 6H) f32
                         yh_ref, yrev_ref):          # scratch (T*B, 2H) f32 each
    B, H = pool_ref.shape
    T = xc_ref.shape[0] // B
    K = w_conv_ref.shape[0] // (4 * H)

    # ---- embedding gather + build [emb(t) | emb(T-1-t)] rows, time-major / batch-minor ----
    # ids from SMEM (scalar reads), table rows via dynamic leading-dim index; full 128-lane
    # row stores, all off the recurrence critical path.
    for t in range(T):
        for b in range(B):
            fwd = emb_ref[ids_ref[b * T + t]]                     # (1, E)
            bwd = emb_ref[ids_ref[b * T + (T - 1 - t)]]           # (1, E)
            r0 = t * B + b
            xc_ref[r0:r0 + 1, :] = jnp.concatenate([fwd, bwd], axis=-1)

    # ---- input projection for BOTH directions / all timesteps: one 2-D bf16 MXU dot ----
    # Gate columns: [r_f | r_b | z_f | z_b | n_f | n_b]; b_in already contains the
    # hidden-side r/z biases (folded at pack time).
    gi_ref[...] = (jnp.dot(xc_ref[...].astype(jnp.bfloat16), w_in_ref[...],
                           preferred_element_type=jnp.float32)
                   + b_in_ref[...])

    w_hh = w_hh_ref[...]          # (2H, 6H) bf16, hoisted out of the unrolled loop
    b_hn = b_hn_ref[...]          # (1, 2H)  f32

    # ---- bidirectional GRU recurrence (fully unrolled, static indices) -----------------
    h = jnp.zeros((B, 2 * H), jnp.float32)              # [h_fwd | h_bwd]
    for t in range(T):
        gi = gi_ref[t * B:(t + 1) * B, :]                                  # (B, 6H)
        gh = jnp.dot(h.astype(jnp.bfloat16), w_hh,
                     preferred_element_type=jnp.float32)                   # (B, 6H)
        rz = jax.nn.sigmoid(gi[:, :4 * H] + gh[:, :4 * H])                 # [r_f,r_b,z_f,z_b]
        r = rz[:, :2 * H]                                                  # offset 0 vreg0
        z = rz[:, 2 * H:]                                                  # rotate hidden under tanh
        n = jnp.tanh(gi[:, 4 * H:] + r * (gh[:, 4 * H:] + b_hn))           # offset 0 vreg1
        h = (1.0 - z) * n + z * h                                          # (B, 2H)
        # two full-width (64-lane) stores, both off the h dependency chain:
        yh_ref[t * B:(t + 1) * B, :] = h                 # forward-time order
        yrev_ref[(T - 1 - t) * B:(T - t) * B, :] = h     # reverse-time order (for bwd half)

    # ---- conv1d(k=3, valid) + ReLU + global max-pool over time, all in VMEM -------------
    # im2col column order per tap k: [yh(2H) | yrev(2H)]; the conv weight zero-pads the
    # unused halves, so no lane slicing / flip is needed.
    tout = T - (K - 1)
    yh = yh_ref[...].astype(jnp.bfloat16)                # (T*B, 2H)
    yr = yrev_ref[...].astype(jnp.bfloat16)
    cols = []
    for k in range(K):
        cols.append(yh[k * B:(k + tout) * B, :])
        cols.append(yr[k * B:(k + tout) * B, :])
    im2col = jnp.concatenate(cols, axis=-1)              # (tout*B, K*4H)
    conv = (jnp.dot(im2col, w_conv_ref[...], preferred_element_type=jnp.float32)
            + b_conv_ref[...])                           # (tout*B, H), t-major rows
    pool = conv[0:B, :]
    for t in range(1, tout):
        pool = jnp.maximum(pool, conv[t * B:(t + 1) * B, :])
    pool_ref[...] = jnp.maximum(pool, 0.0)               # ReLU commutes with the max


def init_params(key):
    ks = jax.random.split(key, 13)
    s_rnn = 1.0 / float(jnp.sqrt(HIDDEN))
    s_conv = 1.0 / float(jnp.sqrt(EMBED * KERNEL))
    u = lambda k, shape, s: jax.random.uniform(k, shape, jnp.float32, -s, s)
    p = {
        'embed':  jax.random.normal(ks[0], (VOCAB_SIZE, EMBED), jnp.float32),
        # GRU params in PyTorch layout: weight_ih (3H, E), weight_hh (3H, H), biases (3H,)
        'w_ih_f': u(ks[1], (3 * HIDDEN, EMBED), s_rnn),
        'w_hh_f': u(ks[2], (3 * HIDDEN, HIDDEN), s_rnn),
        'b_ih_f': u(ks[3], (3 * HIDDEN,), s_rnn),
        'b_hh_f': u(ks[4], (3 * HIDDEN,), s_rnn),
        'w_ih_b': u(ks[5], (3 * HIDDEN, EMBED), s_rnn),
        'w_hh_b': u(ks[6], (3 * HIDDEN, HIDDEN), s_rnn),
        'b_ih_b': u(ks[7], (3 * HIDDEN,), s_rnn),
        'b_hh_b': u(ks[8], (3 * HIDDEN,), s_rnn),
        # Conv1d params in PyTorch layout: (out_ch, in_ch, k)
        'conv_w': u(ks[9], (HIDDEN, EMBED, KERNEL), s_conv),
        'conv_b': u(ks[10], (HIDDEN,), s_conv),
        # decision layer: defined in __init__ but never applied in forward
        'dec_w':  u(ks[11], (HASHTAG_VOCAB_SIZE, HIDDEN), s_rnn),
        'dec_b':  u(ks[12], (HASHTAG_VOCAB_SIZE,), s_rnn),
    }
    return p


def pack_params(p):
    """One-time (init-path) repacking into kernel-friendly layouts."""
    H, E, K = HIDDEN, EMBED, KERNEL

    def gates(w):  # (3H, X) -> r, z, n, each transposed to (X, H)
        return w[0:H].T, w[H:2 * H].T, w[2 * H:3 * H].T

    # block-diagonal input projection, gate columns [r_f r_b z_f z_b n_f n_b]
    wfr, wfz, wfn = gates(p['w_ih_f'])
    wbr, wbz, wbn = gates(p['w_ih_b'])
    ze = jnp.zeros((E, H), jnp.float32)
    w_in = jnp.concatenate([
        jnp.concatenate([wfr, ze, wfz, ze, wfn, ze], axis=1),
        jnp.concatenate([ze, wbr, ze, wbz, ze, wbn], axis=1)], axis=0)      # (2E, 6H)

    hfr, hfz, hfn = gates(p['w_hh_f'])
    hbr, hbz, hbn = gates(p['w_hh_b'])
    zh = jnp.zeros((H, H), jnp.float32)
    w_hh = jnp.concatenate([
        jnp.concatenate([hfr, zh, hfz, zh, hfn, zh], axis=1),
        jnp.concatenate([zh, hbr, zh, hbz, zh, hbn], axis=1)], axis=0)      # (2H, 6H)

    bif, bib, bhf, bhb = p['b_ih_f'], p['b_ih_b'], p['b_hh_f'], p['b_hh_b']
    # hidden-side r/z biases fold into the input projection; n-gate hidden bias stays separate
    b_in = jnp.concatenate([
        bif[0:H] + bhf[0:H],           bib[0:H] + bhb[0:H],
        bif[H:2 * H] + bhf[H:2 * H],   bib[H:2 * H] + bhb[H:2 * H],
        bif[2 * H:3 * H],              bib[2 * H:3 * H]])[None, :]          # (1, 6H)
    b_hn = jnp.concatenate([bhf[2 * H:3 * H], bhb[2 * H:3 * H]])[None, :]   # (1, 2H)

    # conv taps stacked as [Wf_k; 0; 0; Wb_k] per tap, matching the kernel's
    # per-tap [yh(2H) | yrev(2H)] im2col column order.
    wc = p['conv_w']                       # (H, 2H, K)
    zc = jnp.zeros((H, H), jnp.float32)
    taps = []
    for k in range(K):
        taps += [wc[:, 0:H, k].T, zc, zc, wc[:, H:2 * H, k].T]
    w_conv = jnp.concatenate(taps, axis=0)                                  # (K*4H, H)

    return {
        'embed':  p['embed'].reshape(VOCAB_SIZE, 1, EMBED),   # (V,1,E) for dynamic row gather
        'w_in':   w_in.astype(jnp.bfloat16),
        'w_hh':   w_hh.astype(jnp.bfloat16),
        'w_conv': w_conv.astype(jnp.bfloat16),
        'b_in':   b_in,
        'b_hn':   b_hn,
        'b_conv': p['conv_b'][None, :],
    }


@jax.jit
def cnn_rnn_forward(packed, x):
    B, T = x.shape
    H = HIDDEN
    E = EMBED
    ids = x.reshape(B * T).astype(jnp.int32)

    smem = pl.BlockSpec(memory_space=pltpu.MemorySpace.SMEM)
    vmem = pl.BlockSpec(memory_space=pltpu.MemorySpace.VMEM)
    ins = (ids, packed['embed'], packed['w_in'], packed['b_in'],
           packed['w_hh'], packed['b_hn'], packed['w_conv'], packed['b_conv'])

    # Single fused kernel, no grid: total live footprint is a few hundred KB, far below
    # VMEM limits on v5e/v6e/v7x, and any grid step would cost more than the kernel itself.
    pool = pl.pallas_call(
        cnn_rnn_fused_kernel,
        out_shape=jax.ShapeDtypeStruct((B, H), jnp.float32),
        in_specs=[smem] + [vmem] * 7,
        out_specs=vmem,
        scratch_shapes=[
            pltpu.VMEM((T * B, 2 * E), jnp.float32),   # x_cat rows (built in-kernel)
            pltpu.VMEM((T * B, 6 * H), jnp.float32),   # gate pre-activations
            pltpu.VMEM((T * B, 2 * H), jnp.float32),   # GRU output, forward-time order
            pltpu.VMEM((T * B, 2 * H), jnp.float32),   # GRU output, reverse-time order
        ],
    )(*ins)

    # TODO(synk): the PyTorch forward has no return statement (returns None) and never
    # applies self.decision; we return the pooled tensor in F.max_pool1d's NCL layout.
    return pool[:, :, None]                            # (B, H, 1)


if __name__ == "__main__":
    key = jax.random.PRNGKey(0)
    pkey, xkey = jax.random.split(key)
    raw = init_params(pkey)
    packed = pack_params(raw)                          # one-time packing, outside the jitted path
    x = jax.random.randint(xkey, (BATCH, SEQ), 0, VOCAB_SIZE, dtype=jnp.int32)
    out = cnn_rnn_forward(packed, x)
    jax.block_until_ready(out)
    assert out.shape == (BATCH, HIDDEN, 1) and out.dtype == jnp.float32
    print("KERNEL_OK")
</pallas_src>

<mosaic_0001>
module attributes {stable_mosaic.version = 11 : i64} {
  func.func @cnn_rnn_fused_kernel(%arg0: memref<16xi32, #tpu.memory_space<smem>>, %arg1: memref<50x1x64xf32, #tpu.memory_space<vmem>>, %arg2: memref<128x192xbf16, #tpu.memory_space<vmem>>, %arg3: memref<1x192xf32, #tpu.memory_space<vmem>>, %arg4: memref<64x192xbf16, #tpu.memory_space<vmem>>, %arg5: memref<1x64xf32, #tpu.memory_space<vmem>>, %arg6: memref<384x32xbf16, #tpu.memory_space<vmem>>, %arg7: memref<1x32xf32, #tpu.memory_space<vmem>>, %arg8: memref<2x32xf32, #tpu.memory_space<vmem>>, %arg9: memref<16x128xf32, #tpu.memory_space<vmem>>, %arg10: memref<16x192xf32, #tpu.memory_space<vmem>>, %arg11: memref<16x64xf32, #tpu.memory_space<vmem>>, %arg12: memref<16x64xf32, #tpu.memory_space<vmem>>) attributes {dimension_semantics = [], scalar_prefetch = 0 : i64, scratch_operands = 4 : i64, tpu.core_type = #tpu.core_type<tc>} {
    %c0 = arith.constant 0 : index
    %0 = memref.load %arg0[%c0] : memref<16xi32, #tpu.memory_space<smem>>
    %1 = arith.index_cast %0 : i32 to index
    %c0_0 = arith.constant 0 : index
    %c0_1 = arith.constant 0 : index
    %2 = vector.load %arg1[%1, %c0_0, %c0_1] : memref<50x1x64xf32, #tpu.memory_space<vmem>>, vector<1x1x64xf32>
    %3 = vector.shape_cast %2 : vector<1x1x64xf32> to vector<1x64xf32>
    %c7 = arith.constant 7 : index
    %4 = memref.load %arg0[%c7] : memref<16xi32, #tpu.memory_space<smem>>
    %5 = arith.index_cast %4 : i32 to index
    %c0_2 = arith.constant 0 : index
    %c0_3 = arith.constant 0 : index
    %6 = vector.load %arg1[%5, %c0_2, %c0_3] : memref<50x1x64xf32, #tpu.memory_space<vmem>>, vector<1x1x64xf32>
    %7 = vector.shape_cast %6 : vector<1x1x64xf32> to vector<1x64xf32>
    %8 = tpu.concatenate %3, %7 in 1 : vector<1x64xf32>, vector<1x64xf32> -> vector<1x128xf32>
    %c0_4 = arith.constant 0 : index
    %c0_5 = arith.constant 0 : index
    %9 = vector.load %arg9[%c0_4, %c0_5] : memref<16x128xf32, #tpu.memory_space<vmem>>, vector<1x128xf32>
    tpu.vector_store %arg9[%c0_4, %c0_5], %8 {strides = array<i32>} : memref<16x128xf32, #tpu.memory_space<vmem>>, vector<1x128xf32>,
    %c8 = arith.constant 8 : index
    %10 = memref.load %arg0[%c8] : memref<16xi32, #tpu.memory_space<smem>>
    %11 = arith.index_cast %10 : i32 to index
    %c0_6 = arith.constant 0 : index
    %c0_7 = arith.constant 0 : index
    %12 = vector.load %arg1[%11, %c0_6, %c0_7] : memref<50x1x64xf32, #tpu.memory_space<vmem>>, vector<1x1x64xf32>
    %13 = vector.shape_cast %12 : vector<1x1x64xf32> to vector<1x64xf32>
    %c15 = arith.constant 15 : index
    %14 = memref.load %arg0[%c15] : memref<16xi32, #tpu.memory_space<smem>>
    %15 = arith.index_cast %14 : i32 to index
    %c0_8 = arith.constant 0 : index
    %c0_9 = arith.constant 0 : index
    %16 = vector.load %arg1[%15, %c0_8, %c0_9] : memref<50x1x64xf32, #tpu.memory_space<vmem>>, vector<1x1x64xf32>
    %17 = vector.shape_cast %16 : vector<1x1x64xf32> to vector<1x64xf32>
    %18 = tpu.concatenate %13, %17 in 1 : vector<1x64xf32>, vector<1x64xf32> -> vector<1x128xf32>
    %c1 = arith.constant 1 : index
    %c0_10 = arith.constant 0 : index
    %19 = vector.load %arg9[%c1, %c0_10] : memref<16x128xf32, #tpu.memory_space<vmem>>, vector<1x128xf32>
    tpu.vector_store %arg9[%c1, %c0_10], %18 {strides = array<i32>} : memref<16x128xf32, #tpu.memory_space<vmem>>, vector<1x128xf32>,
    %c1_11 = arith.constant 1 : index
    %20 = memref.load %arg0[%c1_11] : memref<16xi32, #tpu.memory_space<smem>>
    %21 = arith.index_cast %20 : i32 to index
    %c0_12 = arith.constant 0 : index
    %c0_13 = arith.constant 0 : index
    %22 = vector.load %arg1[%21, %c0_12, %c0_13] : memref<50x1x64xf32, #tpu.memory_space<vmem>>, vector<1x1x64xf32>
    %23 = vector.shape_cast %22 : vector<1x1x64xf32> to vector<1x64xf32>
    %c6 = arith.constant 6 : index
    %24 = memref.load %arg0[%c6] : memref<16xi32, #tpu.memory_space<smem>>
    %25 = arith.index_cast %24 : i32 to index
    %c0_14 = arith.constant 0 : index
    %c0_15 = arith.constant 0 : index
    %26 = vector.load %arg1[%25, %c0_14, %c0_15] : memref<50x1x64xf32, #tpu.memory_space<vmem>>, vector<1x1x64xf32>
    %27 = vector.shape_cast %26 : vector<1x1x64xf32> to vector<1x64xf32>
    %28 = tpu.concatenate %23, %27 in 1 : vector<1x64xf32>, vector<1x64xf32> -> vector<1x128xf32>
    %c2 = arith.constant 2 : index
    %c0_16 = arith.constant 0 : index
    %29 = vector.load %arg9[%c2, %c0_16] : memref<16x128xf32, #tpu.memory_space<vmem>>, vector<1x128xf32>
    tpu.vector_store %arg9[%c2, %c0_16], %28 {strides = array<i32>} : memref<16x128xf32, #tpu.memory_space<vmem>>, vector<1x128xf32>,
    %c9 = arith.constant 9 : index
    %30 = memref.load %arg0[%c9] : memref<16xi32, #tpu.memory_space<smem>>
    %31 = arith.index_cast %30 : i32 to index
    %c0_17 = arith.constant 0 : index
    %c0_18 = arith.constant 0 : index
    %32 = vector.load %arg1[%31, %c0_17, %c0_18] : memref<50x1x64xf32, #tpu.memory_space<vmem>>, vector<1x1x64xf32>
    %33 = vector.shape_cast %32 : vector<1x1x64xf32> to vector<1x64xf32>
    %c14 = arith.constant 14 : index
    %34 = memref.load %arg0[%c14] : memref<16xi32, #tpu.memory_space<smem>>
    %35 = arith.index_cast %34 : i32 to index
    %c0_19 = arith.constant 0 : index
    %c0_20 = arith.constant 0 : index
    %36 = vector.load %arg1[%35, %c0_19, %c0_20] : memref<50x1x64xf32, #tpu.memory_space<vmem>>, vector<1x1x64xf32>
    %37 = vector.shape_cast %36 : vector<1x1x64xf32> to vector<1x64xf32>
    %38 = tpu.concatenate %33, %37 in 1 : vector<1x64xf32>, vector<1x64xf32> -> vector<1x128xf32>
    %c3 = arith.constant 3 : index
    %c0_21 = arith.constant 0 : index
    %39 = vector.load %arg9[%c3, %c0_21] : memref<16x128xf32, #tpu.memory_space<vmem>>, vector<1x128xf32>
    tpu.vector_store %arg9[%c3, %c0_21], %38 {strides = array<i32>} : memref<16x128xf32, #tpu.memory_space<vmem>>, vector<1x128xf32>,
    %c2_22 = arith.constant 2 : index
    %40 = memref.load %arg0[%c2_22] : memref<16xi32, #tpu.memory_space<smem>>
    %41 = arith.index_cast %40 : i32 to index
    %c0_23 = arith.constant 0 : index
    %c0_24 = arith.constant 0 : index
    %42 = vector.load %arg1[%41, %c0_23, %c0_24] : memref<50x1x64xf32, #tpu.memory_space<vmem>>, vector<1x1x64xf32>
    %43 = vector.shape_cast %42 : vector<1x1x64xf32> to vector<1x64xf32>
    %c5 = arith.constant 5 : index
    %44 = memref.load %arg0[%c5] : memref<16xi32, #tpu.memory_space<smem>>
    %45 = arith.index_cast %44 : i32 to index
    %c0_25 = arith.constant 0 : index
    %c0_26 = arith.constant 0 : index
    %46 = vector.load %arg1[%45, %c0_25, %c0_26] : memref<50x1x64xf32, #tpu.memory_space<vmem>>, vector<1x1x64xf32>
    %47 = vector.shape_cast %46 : vector<1x1x64xf32> to vector<1x64xf32>
    %48 = tpu.concatenate %43, %47 in 1 : vector<1x64xf32>, vector<1x64xf32> -> vector<1x128xf32>
    %c4 = arith.constant 4 : index
    %c0_27 = arith.constant 0 : index
    %49 = vector.load %arg9[%c4, %c0_27] : memref<16x128xf32, #tpu.memory_space<vmem>>, vector<1x128xf32>
    tpu.vector_store %arg9[%c4, %c0_27], %48 {strides = array<i32>} : memref<16x128xf32, #tpu.memory_space<vmem>>, vector<1x128xf32>,
    %c10 = arith.constant 10 : index
    %50 = memref.load %arg0[%c10] : memref<16xi32, #tpu.memory_space<smem>>
    %51 = arith.index_cast %50 : i32 to index
    %c0_28 = arith.constant 0 : index
    %c0_29 = arith.constant 0 : index
    %52 = vector.load %arg1[%51, %c0_28, %c0_29] : memref<50x1x64xf32, #tpu.memory_space<vmem>>, vector<1x1x64xf32>
    %53 = vector.shape_cast %52 : vector<1x1x64xf32> to vector<1x64xf32>
    %c13 = arith.constant 13 : index
    %54 = memref.load %arg0[%c13] : memref<16xi32, #tpu.memory_space<smem>>
    %55 = arith.index_cast %54 : i32 to index
    %c0_30 = arith.constant 0 : index
    %c0_31 = arith.constant 0 : index
    %56 = vector.load %arg1[%55, %c0_30, %c0_31] : memref<50x1x64xf32, #tpu.memory_space<vmem>>, vector<1x1x64xf32>
    %57 = vector.shape_cast %56 : vector<1x1x64xf32> to vector<1x64xf32>
    %58 = tpu.concatenate %53, %57 in 1 : vector<1x64xf32>, vector<1x64xf32> -> vector<1x128xf32>
    %c5_32 = arith.constant 5 : index
    %c0_33 = arith.constant 0 : index
    %59 = vector.load %arg9[%c5_32, %c0_33] : memref<16x128xf32, #tpu.memory_space<vmem>>, vector<1x128xf32>
    tpu.vector_store %arg9[%c5_32, %c0_33], %58 {strides = array<i32>} : memref<16x128xf32, #tpu.memory_space<vmem>>, vector<1x128xf32>,
    %c3_34 = arith.constant 3 : index
    %60 = memref.load %arg0[%c3_34] : memref<16xi32, #tpu.memory_space<smem>>
    %61 = arith.index_cast %60 : i32 to index
    %c0_35 = arith.constant 0 : index
    %c0_36 = arith.constant 0 : index
    %62 = vector.load %arg1[%61, %c0_35, %c0_36] : memref<50x1x64xf32, #tpu.memory_space<vmem>>, vector<1x1x64xf32>
    %63 = vector.shape_cast %62 : vector<1x1x64xf32> to vector<1x64xf32>
    %c4_37 = arith.constant 4 : index
    %64 = memref.load %arg0[%c4_37] : memref<16xi32, #tpu.memory_space<smem>>
    %65 = arith.index_cast %64 : i32 to index
    %c0_38 = arith.constant 0 : index
    %c0_39 = arith.constant 0 : index
    %66 = vector.load %arg1[%65, %c0_38, %c0_39] : memref<50x1x64xf32, #tpu.memory_space<vmem>>, vector<1x1x64xf32>
    %67 = vector.shape_cast %66 : vector<1x1x64xf32> to vector<1x64xf32>
    %68 = tpu.concatenate %63, %67 in 1 : vector<1x64xf32>, vector<1x64xf32> -> vector<1x128xf32>
    %c6_40 = arith.constant 6 : index
    %c0_41 = arith.constant 0 : index
    %69 = vector.load %arg9[%c6_40, %c0_41] : memref<16x128xf32, #tpu.memory_space<vmem>>, vector<1x128xf32>
    tpu.vector_store %arg9[%c6_40, %c0_41], %68 {strides = array<i32>} : memref<16x128xf32, #tpu.memory_space<vmem>>, vector<1x128xf32>,
    %c11 = arith.constant 11 : index
    %70 = memref.load %arg0[%c11] : memref<16xi32, #tpu.memory_space<smem>>
    %71 = arith.index_cast %70 : i32 to index
    %c0_42 = arith.constant 0 : index
    %c0_43 = arith.constant 0 : index
    %72 = vector.load %arg1[%71, %c0_42, %c0_43] : memref<50x1x64xf32, #tpu.memory_space<vmem>>, vector<1x1x64xf32>
    %73 = vector.shape_cast %72 : vector<1x1x64xf32> to vector<1x64xf32>
    %c12 = arith.constant 12 : index
    %74 = memref.load %arg0[%c12] : memref<16xi32, #tpu.memory_space<smem>>
    %75 = arith.index_cast %74 : i32 to index
    %c0_44 = arith.constant 0 : index
    %c0_45 = arith.constant 0 : index
    %76 = vector.load %arg1[%75, %c0_44, %c0_45] : memref<50x1x64xf32, #tpu.memory_space<vmem>>, vector<1x1x64xf32>
    %77 = vector.shape_cast %76 : vector<1x1x64xf32> to vector<1x64xf32>
    %78 = tpu.concatenate %73, %77 in 1 : vector<1x64xf32>, vector<1x64xf32> -> vector<1x128xf32>
    %c7_46 = arith.constant 7 : index
    %c0_47 = arith.constant 0 : index
    %79 = vector.load %arg9[%c7_46, %c0_47] : memref<16x128xf32, #tpu.memory_space<vmem>>, vector<1x128xf32>
    tpu.vector_store %arg9[%c7_46, %c0_47], %78 {strides = array<i32>} : memref<16x128xf32, #tpu.memory_space<vmem>>, vector<1x128xf32>,
    %c4_48 = arith.constant 4 : index
    %80 = memref.load %arg0[%c4_48] : memref<16xi32, #tpu.memory_space<smem>>
    %81 = arith.index_cast %80 : i32 to index
    %c0_49 = arith.constant 0 : index
    %c0_50 = arith.constant 0 : index
    %82 = vector.load %arg1[%81, %c0_49, %c0_50] : memref<50x1x64xf32, #tpu.memory_space<vmem>>, vector<1x1x64xf32>
    %83 = vector.shape_cast %82 : vector<1x1x64xf32> to vector<1x64xf32>
    %c3_51 = arith.constant 3 : index
    %84 = memref.load %arg0[%c3_51] : memref<16xi32, #tpu.memory_space<smem>>
    %85 = arith.index_cast %84 : i32 to index
    %c0_52 = arith.constant 0 : index
    %c0_53 = arith.constant 0 : index
    %86 = vector.load %arg1[%85, %c0_52, %c0_53] : memref<50x1x64xf32, #tpu.memory_space<vmem>>, vector<1x1x64xf32>
    %87 = vector.shape_cast %86 : vector<1x1x64xf32> to vector<1x64xf32>
    %88 = tpu.concatenate %83, %87 in 1 : vector<1x64xf32>, vector<1x64xf32> -> vector<1x128xf32>
    %c8_54 = arith.constant 8 : index
    %c0_55 = arith.constant 0 : index
    %89 = vector.load %arg9[%c8_54, %c0_55] : memref<16x128xf32, #tpu.memory_space<vmem>>, vector<1x128xf32>
    tpu.vector_store %arg9[%c8_54, %c0_55], %88 {strides = array<i32>} : memref<16x128xf32, #tpu.memory_space<vmem>>, vector<1x128xf32>,
    %c12_56 = arith.constant 12 : index
    %90 = memref.load %arg0[%c12_56] : memref<16xi32, #tpu.memory_space<smem>>
    %91 = arith.index_cast %90 : i32 to index
    %c0_57 = arith.constant 0 : index
    %c0_58 = arith.constant 0 : index
    %92 = vector.load %arg1[%91, %c0_57, %c0_58] : memref<50x1x64xf32, #tpu.memory_space<vmem>>, vector<1x1x64xf32>
    %93 = vector.shape_cast %92 : vector<1x1x64xf32> to vector<1x64xf32>
    %c11_59 = arith.constant 11 : index
    %94 = memref.load %arg0[%c11_59] : memref<16xi32, #tpu.memory_space<smem>>
    %95 = arith.index_cast %94 : i32 to index
    %c0_60 = arith.constant 0 : index
    %c0_61 = arith.constant 0 : index
    %96 = vector.load %arg1[%95, %c0_60, %c0_61] : memref<50x1x64xf32, #tpu.memory_space<vmem>>, vector<1x1x64xf32>
    %97 = vector.shape_cast %96 : vector<1x1x64xf32> to vector<1x64xf32>
    %98 = tpu.concatenate %93, %97 in 1 : vector<1x64xf32>, vector<1x64xf32> -> vector<1x128xf32>
    %c9_62 = arith.constant 9 : index
    %c0_63 = arith.constant 0 : index
    %99 = vector.load %arg9[%c9_62, %c0_63] : memref<16x128xf32, #tpu.memory_space<vmem>>, vector<1x128xf32>
    tpu.vector_store %arg9[%c9_62, %c0_63], %98 {strides = array<i32>} : memref<16x128xf32, #tpu.memory_space<vmem>>, vector<1x128xf32>,
    %c5_64 = arith.constant 5 : index
    %100 = memref.load %arg0[%c5_64] : memref<16xi32, #tpu.memory_space<smem>>
    %101 = arith.index_cast %100 : i32 to index
    %c0_65 = arith.constant 0 : index
    %c0_66 = arith.constant 0 : index
    %102 = vector.load %arg1[%101, %c0_65, %c0_66] : memref<50x1x64xf32, #tpu.memory_space<vmem>>, vector<1x1x64xf32>
    %103 = vector.shape_cast %102 : vector<1x1x64xf32> to vector<1x64xf32>
    %c2_67 = arith.constant 2 : index
    %104 = memref.load %arg0[%c2_67] : memref<16xi32, #tpu.memory_space<smem>>
    %105 = arith.index_cast %104 : i32 to index
    %c0_68 = arith.constant 0 : index
    %c0_69 = arith.constant 0 : index
    %106 = vector.load %arg1[%105, %c0_68, %c0_69] : memref<50x1x64xf32, #tpu.memory_space<vmem>>, vector<1x1x64xf32>
    %107 = vector.shape_cast %106 : vector<1x1x64xf32> to vector<1x64xf32>
    %108 = tpu.concatenate %103, %107 in 1 : vector<1x64xf32>, vector<1x64xf32> -> vector<1x128xf32>
    %c10_70 = arith.constant 10 : index
    %c0_71 = arith.constant 0 : index
    %109 = vector.load %arg9[%c10_70, %c0_71] : memref<16x128xf32, #tpu.memory_space<vmem>>, vector<1x128xf32>
    tpu.vector_store %arg9[%c10_70, %c0_71], %108 {strides = array<i32>} : memref<16x128xf32, #tpu.memory_space<vmem>>, vector<1x128xf32>,
    %c13_72 = arith.constant 13 : index
    %110 = memref.load %arg0[%c13_72] : memref<16xi32, #tpu.memory_space<smem>>
    %111 = arith.index_cast %110 : i32 to index
    %c0_73 = arith.constant 0 : index
    %c0_74 = arith.constant 0 : index
    %112 = vector.load %arg1[%111, %c0_73, %c0_74] : memref<50x1x64xf32, #tpu.memory_space<vmem>>, vector<1x1x64xf32>
    %113 = vector.shape_cast %112 : vector<1x1x64xf32> to vector<1x64xf32>
    %c10_75 = arith.constant 10 : index
    %114 = memref.load %arg0[%c10_75] : memref<16xi32, #tpu.memory_space<smem>>
    %115 = arith.index_cast %114 : i32 to index
    %c0_76 = arith.constant 0 : index
    %c0_77 = arith.constant 0 : index
    %116 = vector.load %arg1[%115, %c0_76, %c0_77] : memref<50x1x64xf32, #tpu.memory_space<vmem>>, vector<1x1x64xf32>
    %117 = vector.shape_cast %116 : vector<1x1x64xf32> to vector<1x64xf32>
    %118 = tpu.concatenate %113, %117 in 1 : vector<1x64xf32>, vector<1x64xf32> -> vector<1x128xf32>
    %c11_78 = arith.constant 11 : index
    %c0_79 = arith.constant 0 : index
    %119 = vector.load %arg9[%c11_78, %c0_79] : memref<16x128xf32, #tpu.memory_space<vmem>>, vector<1x128xf32>
    tpu.vector_store %arg9[%c11_78, %c0_79], %118 {strides = array<i32>} : memref<16x128xf32, #tpu.memory_space<vmem>>, vector<1x128xf32>,
    %c6_80 = arith.constant 6 : index
    %120 = memref.load %arg0[%c6_80] : memref<16xi32, #tpu.memory_space<smem>>
    %121 = arith.index_cast %120 : i32 to index
    %c0_81 = arith.constant 0 : index
    %c0_82 = arith.constant 0 : index
    %122 = vector.load %arg1[%121, %c0_81, %c0_82] : memref<50x1x64xf32, #tpu.memory_space<vmem>>, vector<1x1x64xf32>
    %123 = vector.shape_cast %122 : vector<1x1x64xf32> to vector<1x64xf32>
    %c1_83 = arith.constant 1 : index
    %124 = memref.load %arg0[%c1_83] : memref<16xi32, #tpu.memory_space<smem>>
    %125 = arith.index_cast %124 : i32 to index
    %c0_84 = arith.constant 0 : index
    %c0_85 = arith.constant 0 : index
    %126 = vector.load %arg1[%125, %c0_84, %c0_85] : memref<50x1x64xf32, #tpu.memory_space<vmem>>, vector<1x1x64xf32>
    %127 = vector.shape_cast %126 : vector<1x1x64xf32> to vector<1x64xf32>
    %128 = tpu.concatenate %123, %127 in 1 : vector<1x64xf32>, vector<1x64xf32> -> vector<1x128xf32>
    %c12_86 = arith.constant 12 : index
    %c0_87 = arith.constant 0 : index
    %129 = vector.load %arg9[%c12_86, %c0_87] : memref<16x128xf32, #tpu.memory_space<vmem>>, vector<1x128xf32>
    tpu.vector_store %arg9[%c12_86, %c0_87], %128 {strides = array<i32>} : memref<16x128xf32, #tpu.memory_space<vmem>>, vector<1x128xf32>,
    %c14_88 = arith.constant 14 : index
    %130 = memref.load %arg0[%c14_88] : memref<16xi32, #tpu.memory_space<smem>>
    %131 = arith.index_cast %130 : i32 to index
    %c0_89 = arith.constant 0 : index
    %c0_90 = arith.constant 0 : index
    %132 = vector.load %arg1[%131, %c0_89, %c0_90] : memref<50x1x64xf32, #tpu.memory_space<vmem>>, vector<1x1x64xf32>
    %133 = vector.shape_cast %132 : vector<1x1x64xf32> to vector<1x64xf32>
    %c9_91 = arith.constant 9 : index
    %134 = memref.load %arg0[%c9_91] : memref<16xi32, #tpu.memory_space<smem>>
    %135 = arith.index_cast %134 : i32 to index
    %c0_92 = arith.constant 0 : index
    %c0_93 = arith.constant 0 : index
    %136 = vector.load %arg1[%135, %c0_92, %c0_93] : memref<50x1x64xf32, #tpu.memory_space<vmem>>, vector<1x1x64xf32>
    %137 = vector.shape_cast %136 : vector<1x1x64xf32> to vector<1x64xf32>
    %138 = tpu.concatenate %133, %137 in 1 : vector<1x64xf32>, vector<1x64xf32> -> vector<1x128xf32>
    %c13_94 = arith.constant 13 : index
    %c0_95 = arith.constant 0 : index
    %139 = vector.load %arg9[%c13_94, %c0_95] : memref<16x128xf32, #tpu.memory_space<vmem>>, vector<1x128xf32>
    tpu.vector_store %arg9[%c13_94, %c0_95], %138 {strides = array<i32>} : memref<16x128xf32, #tpu.memory_space<vmem>>, vector<1x128xf32>,
    %c7_96 = arith.constant 7 : index
    %140 = memref.load %arg0[%c7_96] : memref<16xi32, #tpu.memory_space<smem>>
    %141 = arith.index_cast %140 : i32 to index
    %c0_97 = arith.constant 0 : index
    %c0_98 = arith.constant 0 : index
    %142 = vector.load %arg1[%141, %c0_97, %c0_98] : memref<50x1x64xf32, #tpu.memory_space<vmem>>, vector<1x1x64xf32>
    %143 = vector.shape_cast %142 : vector<1x1x64xf32> to vector<1x64xf32>
    %c0_99 = arith.constant 0 : index
    %144 = memref.load %arg0[%c0_99] : memref<16xi32, #tpu.memory_space<smem>>
    %145 = arith.index_cast %144 : i32 to index
    %c0_100 = arith.constant 0 : index
    %c0_101 = arith.constant 0 : index
    %146 = vector.load %arg1[%145, %c0_100, %c0_101] : memref<50x1x64xf32, #tpu.memory_space<vmem>>, vector<1x1x64xf32>
    %147 = vector.shape_cast %146 : vector<1x1x64xf32> to vector<1x64xf32>
    %148 = tpu.concatenate %143, %147 in 1 : vector<1x64xf32>, vector<1x64xf32> -> vector<1x128xf32>
    %c14_102 = arith.constant 14 : index
    %c0_103 = arith.constant 0 : index
    %149 = vector.load %arg9[%c14_102, %c0_103] : memref<16x128xf32, #tpu.memory_space<vmem>>, vector<1x128xf32>
    tpu.vector_store %arg9[%c14_102, %c0_103], %148 {strides = array<i32>} : memref<16x128xf32, #tpu.memory_space<vmem>>, vector<1x128xf32>,
    %c15_104 = arith.constant 15 : index
    %150 = memref.load %arg0[%c15_104] : memref<16xi32, #tpu.memory_space<smem>>
    %151 = arith.index_cast %150 : i32 to index
    %c0_105 = arith.constant 0 : index
    %c0_106 = arith.constant 0 : index
    %152 = vector.load %arg1[%151, %c0_105, %c0_106] : memref<50x1x64xf32, #tpu.memory_space<vmem>>, vector<1x1x64xf32>
    %153 = vector.shape_cast %152 : vector<1x1x64xf32> to vector<1x64xf32>
    %c8_107 = arith.constant 8 : index
    %154 = memref.load %arg0[%c8_107] : memref<16xi32, #tpu.memory_space<smem>>
    %155 = arith.index_cast %154 : i32 to index
    %c0_108 = arith.constant 0 : index
    %c0_109 = arith.constant 0 : index
    %156 = vector.load %arg1[%155, %c0_108, %c0_109] : memref<50x1x64xf32, #tpu.memory_space<vmem>>, vector<1x1x64xf32>
    %157 = vector.shape_cast %156 : vector<1x1x64xf32> to vector<1x64xf32>
    %158 = tpu.concatenate %153, %157 in 1 : vector<1x64xf32>, vector<1x64xf32> -> vector<1x128xf32>
    %c15_110 = arith.constant 15 : index
    %c0_111 = arith.constant 0 : index
    %159 = vector.load %arg9[%c15_110, %c0_111] : memref<16x128xf32, #tpu.memory_space<vmem>>, vector<1x128xf32>
    tpu.vector_store %arg9[%c15_110, %c0_111], %158 {strides = array<i32>} : memref<16x128xf32, #tpu.memory_space<vmem>>, vector<1x128xf32>,
    %c0_112 = arith.constant 0 : index
    %c0_113 = arith.constant 0 : index
    %160 = vector.load %arg9[%c0_112, %c0_113] : memref<16x128xf32, #tpu.memory_space<vmem>>, vector<16x128xf32>
    %161 = arith.truncf %160 : vector<16x128xf32> to vector<16x128xbf16>
    %c0_114 = arith.constant 0 : index
    %c0_115 = arith.constant 0 : index
    %162 = vector.load %arg2[%c0_114, %c0_115] : memref<128x192xbf16, #tpu.memory_space<vmem>>, vector<128x192xbf16>
    %cst = arith.constant dense<0.000000e+00> : vector<16x192xf32>
    %163 = tpu.matmul %161, %162, %cst {dimension_numbers = #tpu.dot_dimension_numbers<[1], [0], [0], [1], [0, 0, 1, 1], [], []>} : vector<16x128xbf16>, vector<128x192xbf16>, vector<16x192xf32> -> vector<16x192xf32>
    %c0_116 = arith.constant 0 : index
    %c0_117 = arith.constant 0 : index
    %164 = vector.load %arg3[%c0_116, %c0_117] : memref<1x192xf32, #tpu.memory_space<vmem>>, vector<1x192xf32>
    %165 = vector.broadcast %164 : vector<1x192xf32> to vector<16x192xf32>
    %166 = arith.addf %163, %165 : vector<16x192xf32>
    %c0_118 = arith.constant 0 : index
    %c0_119 = arith.constant 0 : index
    %167 = vector.load %arg10[%c0_118, %c0_119] : memref<16x192xf32, #tpu.memory_space<vmem>>, vector<16x192xf32>
    tpu.vector_store %arg10[%c0_118, %c0_119], %166 {strides = array<i32>} : memref<16x192xf32, #tpu.memory_space<vmem>>, vector<16x192xf32>,
    %c0_120 = arith.constant 0 : index
    %c0_121 = arith.constant 0 : index
    %168 = vector.load %arg4[%c0_120, %c0_121] : memref<64x192xbf16, #tpu.memory_space<vmem>>, vector<64x192xbf16>
    %c0_122 = arith.constant 0 : index
    %c0_123 = arith.constant 0 : index
    %169 = vector.load %arg5[%c0_122, %c0_123] : memref<1x64xf32, #tpu.memory_space<vmem>>, vector<1x64xf32>
    %cst_124 = arith.constant 0.000000e+00 : f32
    %170 = vector.broadcast %cst_124 : f32 to vector<2x64xf32>
    %c0_125 = arith.constant 0 : index
    %c0_126 = arith.constant 0 : index
    %171 = vector.load %arg10[%c0_125, %c0_126] : memref<16x192xf32, #tpu.memory_space<vmem>>, vector<2x192xf32>
    %172 = arith.truncf %170 : vector<2x64xf32> to vector<2x64xbf16>
    %cst_127 = arith.constant dense<0.000000e+00> : vector<2x192xf32>
    %173 = tpu.matmul %172, %168, %cst_127 {dimension_numbers = #tpu.dot_dimension_numbers<[1], [0], [0], [1], [0, 0, 1, 1], [], []>} : vector<2x64xbf16>, vector<64x192xbf16>, vector<2x192xf32> -> vector<2x192xf32>
    %174 = vector.extract_strided_slice %171 {offsets = [0, 0], sizes = [2, 128], strides = [1, 1]} : vector<2x192xf32> to vector<2x128xf32>
    %175 = vector.extract_strided_slice %173 {offsets = [0, 0], sizes = [2, 128], strides = [1, 1]} : vector<2x192xf32> to vector<2x128xf32>
    %176 = arith.addf %174, %175 : vector<2x128xf32>
    %177 = arith.negf %176 : vector<2x128xf32>
    %178 = math.exp %177 : vector<2x128xf32>
    %cst_128 = arith.constant 1.000000e+00 : f32
    %179 = vector.broadcast %cst_128 : f32 to vector<2x128xf32>
    %180 = arith.addf %179, %178 : vector<2x128xf32>
    %181 = arith.divf %179, %180 : vector<2x128xf32>
    %182 = vector.extract_strided_slice %181 {offsets = [0, 0], sizes = [2, 64], strides = [1, 1]} : vector<2x128xf32> to vector<2x64xf32>
    %183 = vector.extract_strided_slice %181 {offsets = [0, 64], sizes = [2, 64], strides = [1, 1]} : vector<2x128xf32> to vector<2x64xf32>
    %184 = vector.extract_strided_slice %171 {offsets = [0, 128], sizes = [2, 64], strides = [1, 1]} : vector<2x192xf32> to vector<2x64xf32>
    %185 = vector.extract_strided_slice %173 {offsets = [0, 128], sizes = [2, 64], strides = [1, 1]} : vector<2x192xf32> to vector<2x64xf32>
    %186 = vector.broadcast %169 : vector<1x64xf32> to vector<2x64xf32>
    %187 = arith.addf %185, %186 : vector<2x64xf32>
    %188 = arith.mulf %182, %187 : vector<2x64xf32>
    %189 = arith.addf %184, %188 : vector<2x64xf32>
    %190 = math.tanh %189 : vector<2x64xf32>
    %cst_129 = arith.constant 1.000000e+00 : f32
    %191 = vector.broadcast %cst_129 : f32 to vector<2x64xf32>
    %192 = arith.subf %191, %183 : vector<2x64xf32>
    %193 = arith.mulf %192, %190 : vector<2x64xf32>
    %194 = arith.mulf %183, %170 : vector<2x64xf32>
    %195 = arith.addf %193, %194 : vector<2x64xf32>
    %c0_130 = arith.constant 0 : index
    %c0_131 = arith.constant 0 : index
    %196 = vector.load %arg11[%c0_130, %c0_131] : memref<16x64xf32, #tpu.memory_space<vmem>>, vector<2x64xf32>
    tpu.vector_store %arg11[%c0_130, %c0_131], %195 {strides = array<i32>} : memref<16x64xf32, #tpu.memory_space<vmem>>, vector<2x64xf32>,
    %c14_132 = arith.constant 14 : index
    %c0_133 = arith.constant 0 : index
    %197 = vector.load %arg12[%c14_132, %c0_133] : memref<16x64xf32, #tpu.memory_space<vmem>>, vector<2x64xf32>
    tpu.vector_store %arg12[%c14_132, %c0_133], %195 {strides = array<i32>} : memref<16x64xf32, #tpu.memory_space<vmem>>, vector<2x64xf32>,
    %c2_134 = arith.constant 2 : index
    %c0_135 = arith.constant 0 : index
    %198 = vector.load %arg10[%c2_134, %c0_135] : memref<16x192xf32, #tpu.memory_space<vmem>>, vector<2x192xf32>
    %199 = arith.truncf %195 : vector<2x64xf32> to vector<2x64xbf16>
    %cst_136 = arith.constant dense<0.000000e+00> : vector<2x192xf32>
    %200 = tpu.matmul %199, %168, %cst_136 {dimension_numbers = #tpu.dot_dimension_numbers<[1], [0], [0], [1], [0, 0, 1, 1], [], []>} : vector<2x64xbf16>, vector<64x192xbf16>, vector<2x192xf32> -> vector<2x192xf32>
    %201 = vector.extract_strided_slice %198 {offsets = [0, 0], sizes = [2, 128], strides = [1, 1]} : vector<2x192xf32> to vector<2x128xf32>
    %202 = vector.extract_strided_slice %200 {offsets = [0, 0], sizes = [2, 128], strides = [1, 1]} : vector<2x192xf32> to vector<2x128xf32>
    %203 = arith.addf %201, %202 : vector<2x128xf32>
    %204 = arith.negf %203 : vector<2x128xf32>
    %205 = math.exp %204 : vector<2x128xf32>
    %cst_137 = arith.constant 1.000000e+00 : f32
    %206 = vector.broadcast %cst_137 : f32 to vector<2x128xf32>
    %207 = arith.addf %206, %205 : vector<2x128xf32>
    %208 = arith.divf %206, %207 : vector<2x128xf32>
    %209 = vector.extract_strided_slice %208 {offsets = [0, 0], sizes = [2, 64], strides = [1, 1]} : vector<2x128xf32> to vector<2x64xf32>
    %210 = vector.extract_strided_slice %208 {offsets = [0, 64], sizes = [2, 64], strides = [1, 1]} : vector<2x128xf32> to vector<2x64xf32>
    %211 = vector.extract_strided_slice %198 {offsets = [0, 128], sizes = [2, 64], strides = [1, 1]} : vector<2x192xf32> to vector<2x64xf32>
    %212 = vector.extract_strided_slice %200 {offsets = [0, 128], sizes = [2, 64], strides = [1, 1]} : vector<2x192xf32> to vector<2x64xf32>
    %213 = vector.broadcast %169 : vector<1x64xf32> to vector<2x64xf32>
    %214 = arith.addf %212, %213 : vector<2x64xf32>
    %215 = arith.mulf %209, %214 : vector<2x64xf32>
    %216 = arith.addf %211, %215 : vector<2x64xf32>
    %217 = math.tanh %216 : vector<2x64xf32>
    %cst_138 = arith.constant 1.000000e+00 : f32
    %218 = vector.broadcast %cst_138 : f32 to vector<2x64xf32>
    %219 = arith.subf %218, %210 : vector<2x64xf32>
    %220 = arith.mulf %219, %217 : vector<2x64xf32>
    %221 = arith.mulf %210, %195 : vector<2x64xf32>
    %222 = arith.addf %220, %221 : vector<2x64xf32>
    %c2_139 = arith.constant 2 : index
    %c0_140 = arith.constant 0 : index
    %223 = vector.load %arg11[%c2_139, %c0_140] : memref<16x64xf32, #tpu.memory_space<vmem>>, vector<2x64xf32>
    tpu.vector_store %arg11[%c2_139, %c0_140], %222 {strides = array<i32>} : memref<16x64xf32, #tpu.memory_space<vmem>>, vector<2x64xf32>,
    %c12_141 = arith.constant 12 : index
    %c0_142 = arith.constant 0 : index
    %224 = vector.load %arg12[%c12_141, %c0_142] : memref<16x64xf32, #tpu.memory_space<vmem>>, vector<2x64xf32>
    tpu.vector_store %arg12[%c12_141, %c0_142], %222 {strides = array<i32>} : memref<16x64xf32, #tpu.memory_space<vmem>>, vector<2x64xf32>,
    %c4_143 = arith.constant 4 : index
    %c0_144 = arith.constant 0 : index
    %225 = vector.load %arg10[%c4_143, %c0_144] : memref<16x192xf32, #tpu.memory_space<vmem>>, vector<2x192xf32>
    %226 = arith.truncf %222 : vector<2x64xf32> to vector<2x64xbf16>
    %cst_145 = arith.constant dense<0.000000e+00> : vector<2x192xf32>
    %227 = tpu.matmul %226, %168, %cst_145 {dimension_numbers = #tpu.dot_dimension_numbers<[1], [0], [0], [1], [0, 0, 1, 1], [], []>} : vector<2x64xbf16>, vector<64x192xbf16>, vector<2x192xf32> -> vector<2x192xf32>
    %228 = vector.extract_strided_slice %225 {offsets = [0, 0], sizes = [2, 128], strides = [1, 1]} : vector<2x192xf32> to vector<2x128xf32>
    %229 = vector.extract_strided_slice %227 {offsets = [0, 0], sizes = [2, 128], strides = [1, 1]} : vector<2x192xf32> to vector<2x128xf32>
    %230 = arith.addf %228, %229 : vector<2x128xf32>
    %231 = arith.negf %230 : vector<2x128xf32>
    %232 = math.exp %231 : vector<2x128xf32>
    %cst_146 = arith.constant 1.000000e+00 : f32
    %233 = vector.broadcast %cst_146 : f32 to vector<2x128xf32>
    %234 = arith.addf %233, %232 : vector<2x128xf32>
    %235 = arith.divf %233, %234 : vector<2x128xf32>
    %236 = vector.extract_strided_slice %235 {offsets = [0, 0], sizes = [2, 64], strides = [1, 1]} : vector<2x128xf32> to vector<2x64xf32>
    %237 = vector.extract_strided_slice %235 {offsets = [0, 64], sizes = [2, 64], strides = [1, 1]} : vector<2x128xf32> to vector<2x64xf32>
    %238 = vector.extract_strided_slice %225 {offsets = [0, 128], sizes = [2, 64], strides = [1, 1]} : vector<2x192xf32> to vector<2x64xf32>
    %239 = vector.extract_strided_slice %227 {offsets = [0, 128], sizes = [2, 64], strides = [1, 1]} : vector<2x192xf32> to vector<2x64xf32>
    %240 = vector.broadcast %169 : vector<1x64xf32> to vector<2x64xf32>
    %241 = arith.addf %239, %240 : vector<2x64xf32>
    %242 = arith.mulf %236, %241 : vector<2x64xf32>
    %243 = arith.addf %238, %242 : vector<2x64xf32>
    %244 = math.tanh %243 : vector<2x64xf32>
    %cst_147 = arith.constant 1.000000e+00 : f32
    %245 = vector.broadcast %cst_147 : f32 to vector<2x64xf32>
    %246 = arith.subf %245, %237 : vector<2x64xf32>
    %247 = arith.mulf %246, %244 : vector<2x64xf32>
    %248 = arith.mulf %237, %222 : vector<2x64xf32>
    %249 = arith.addf %247, %248 : vector<2x64xf32>
    %c4_148 = arith.constant 4 : index
    %c0_149 = arith.constant 0 : index
    %250 = vector.load %arg11[%c4_148, %c0_149] : memref<16x64xf32, #tpu.memory_space<vmem>>, vector<2x64xf32>
    tpu.vector_store %arg11[%c4_148, %c0_149], %249 {strides = array<i32>} : memref<16x64xf32, #tpu.memory_space<vmem>>, vector<2x64xf32>,
    %c10_150 = arith.constant 10 : index
    %c0_151 = arith.constant 0 : index
    %251 = vector.load %arg12[%c10_150, %c0_151] : memref<16x64xf32, #tpu.memory_space<vmem>>, vector<2x64xf32>
    tpu.vector_store %arg12[%c10_150, %c0_151], %249 {strides = array<i32>} : memref<16x64xf32, #tpu.memory_space<vmem>>, vector<2x64xf32>,
    %c6_152 = arith.constant 6 : index
    %c0_153 = arith.constant 0 : index
    %252 = vector.load %arg10[%c6_152, %c0_153] : memref<16x192xf32, #tpu.memory_space<vmem>>, vector<2x192xf32>
    %253 = arith.truncf %249 : vector<2x64xf32> to vector<2x64xbf16>
    %cst_154 = arith.constant dense<0.000000e+00> : vector<2x192xf32>
    %254 = tpu.matmul %253, %168, %cst_154 {dimension_numbers = #tpu.dot_dimension_numbers<[1], [0], [0], [1], [0, 0, 1, 1], [], []>} : vector<2x64xbf16>, vector<64x192xbf16>, vector<2x192xf32> -> vector<2x192xf32>
    %255 = vector.extract_strided_slice %252 {offsets = [0, 0], sizes = [2, 128], strides = [1, 1]} : vector<2x192xf32> to vector<2x128xf32>
    %256 = vector.extract_strided_slice %254 {offsets = [0, 0], sizes = [2, 128], strides = [1, 1]} : vector<2x192xf32> to vector<2x128xf32>
    %257 = arith.addf %255, %256 : vector<2x128xf32>
    %258 = arith.negf %257 : vector<2x128xf32>
    %259 = math.exp %258 : vector<2x128xf32>
    %cst_155 = arith.constant 1.000000e+00 : f32
    %260 = vector.broadcast %cst_155 : f32 to vector<2x128xf32>
    %261 = arith.addf %260, %259 : vector<2x128xf32>
    %262 = arith.divf %260, %261 : vector<2x128xf32>
    %263 = vector.extract_strided_slice %262 {offsets = [0, 0], sizes = [2, 64], strides = [1, 1]} : vector<2x128xf32> to vector<2x64xf32>
    %264 = vector.extract_strided_slice %262 {offsets = [0, 64], sizes = [2, 64], strides = [1, 1]} : vector<2x128xf32> to vector<2x64xf32>
    %265 = vector.extract_strided_slice %252 {offsets = [0, 128], sizes = [2, 64], strides = [1, 1]} : vector<2x192xf32> to vector<2x64xf32>
    %266 = vector.extract_strided_slice %254 {offsets = [0, 128], sizes = [2, 64], strides = [1, 1]} : vector<2x192xf32> to vector<2x64xf32>
    %267 = vector.broadcast %169 : vector<1x64xf32> to vector<2x64xf32>
    %268 = arith.addf %266, %267 : vector<2x64xf32>
    %269 = arith.mulf %263, %268 : vector<2x64xf32>
    %270 = arith.addf %265, %269 : vector<2x64xf32>
    %271 = math.tanh %270 : vector<2x64xf32>
    %cst_156 = arith.constant 1.000000e+00 : f32
    %272 = vector.broadcast %cst_156 : f32 to vector<2x64xf32>
    %273 = arith.subf %272, %264 : vector<2x64xf32>
    %274 = arith.mulf %273, %271 : vector<2x64xf32>
    %275 = arith.mulf %264, %249 : vector<2x64xf32>
    %276 = arith.addf %274, %275 : vector<2x64xf32>
    %c6_157 = arith.constant 6 : index
    %c0_158 = arith.constant 0 : index
    %277 = vector.load %arg11[%c6_157, %c0_158] : memref<16x64xf32, #tpu.memory_space<vmem>>, vector<2x64xf32>
    tpu.vector_store %arg11[%c6_157, %c0_158], %276 {strides = array<i32>} : memref<16x64xf32, #tpu.memory_space<vmem>>, vector<2x64xf32>,
    %c8_159 = arith.constant 8 : index
    %c0_160 = arith.constant 0 : index
    %278 = vector.load %arg12[%c8_159, %c0_160] : memref<16x64xf32, #tpu.memory_space<vmem>>, vector<2x64xf32>
    tpu.vector_store %arg12[%c8_159, %c0_160], %276 {strides = array<i32>} : memref<16x64xf32, #tpu.memory_space<vmem>>, vector<2x64xf32>,
    %c8_161 = arith.constant 8 : index
    %c0_162 = arith.constant 0 : index
    %279 = vector.load %arg10[%c8_161, %c0_162] : memref<16x192xf32, #tpu.memory_space<vmem>>, vector<2x192xf32>
    %280 = arith.truncf %276 : vector<2x64xf32> to vector<2x64xbf16>
    %cst_163 = arith.constant dense<0.000000e+00> : vector<2x192xf32>
    %281 = tpu.matmul %280, %168, %cst_163 {dimension_numbers = #tpu.dot_dimension_numbers<[1], [0], [0], [1], [0, 0, 1, 1], [], []>} : vector<2x64xbf16>, vector<64x192xbf16>, vector<2x192xf32> -> vector<2x192xf32>
    %282 = vector.extract_strided_slice %279 {offsets = [0, 0], sizes = [2, 128], strides = [1, 1]} : vector<2x192xf32> to vector<2x128xf32>
    %283 = vector.extract_strided_slice %281 {offsets = [0, 0], sizes = [2, 128], strides = [1, 1]} : vector<2x192xf32> to vector<2x128xf32>
    %284 = arith.addf %282, %283 : vector<2x128xf32>
    %285 = arith.negf %284 : vector<2x128xf32>
    %286 = math.exp %285 : vector<2x128xf32>
    %cst_164 = arith.constant 1.000000e+00 : f32
    %287 = vector.broadcast %cst_164 : f32 to vector<2x128xf32>
    %288 = arith.addf %287, %286 : vector<2x128xf32>
    %289 = arith.divf %287, %288 : vector<2x128xf32>
    %290 = vector.extract_strided_slice %289 {offsets = [0, 0], sizes = [2, 64], strides = [1, 1]} : vector<2x128xf32> to vector<2x64xf32>
    %291 = vector.extract_strided_slice %289 {offsets = [0, 64], sizes = [2, 64], strides = [1, 1]} : vector<2x128xf32> to vector<2x64xf32>
    %292 = vector.extract_strided_slice %279 {offsets = [0, 128], sizes = [2, 64], strides = [1, 1]} : vector<2x192xf32> to vector<2x64xf32>
    %293 = vector.extract_strided_slice %281 {offsets = [0, 128], sizes = [2, 64], strides = [1, 1]} : vector<2x192xf32> to vector<2x64xf32>
    %294 = vector.broadcast %169 : vector<1x64xf32> to vector<2x64xf32>
    %295 = arith.addf %293, %294 : vector<2x64xf32>
    %296 = arith.mulf %290, %295 : vector<2x64xf32>
    %297 = arith.addf %292, %296 : vector<2x64xf32>
    %298 = math.tanh %297 : vector<2x64xf32>
    %cst_165 = arith.constant 1.000000e+00 : f32
    %299 = vector.broadcast %cst_165 : f32 to vector<2x64xf32>
    %300 = arith.subf %299, %291 : vector<2x64xf32>
    %301 = arith.mulf %300, %298 : vector<2x64xf32>
    %302 = arith.mulf %291, %276 : vector<2x64xf32>
    %303 = arith.addf %301, %302 : vector<2x64xf32>
    %c8_166 = arith.constant 8 : index
    %c0_167 = arith.constant 0 : index
    %304 = vector.load %arg11[%c8_166, %c0_167] : memref<16x64xf32, #tpu.memory_space<vmem>>, vector<2x64xf32>
    tpu.vector_store %arg11[%c8_166, %c0_167], %303 {strides = array<i32>} : memref<16x64xf32, #tpu.memory_space<vmem>>, vector<2x64xf32>,
    %c6_168 = arith.constant 6 : index
    %c0_169 = arith.constant 0 : index
    %305 = vector.load %arg12[%c6_168, %c0_169] : memref<16x64xf32, #tpu.memory_space<vmem>>, vector<2x64xf32>
    tpu.vector_store %arg12[%c6_168, %c0_169], %303 {strides = array<i32>} : memref<16x64xf32, #tpu.memory_space<vmem>>, vector<2x64xf32>,
    %c10_170 = arith.constant 10 : index
    %c0_171 = arith.constant 0 : index
    %306 = vector.load %arg10[%c10_170, %c0_171] : memref<16x192xf32, #tpu.memory_space<vmem>>, vector<2x192xf32>
    %307 = arith.truncf %303 : vector<2x64xf32> to vector<2x64xbf16>
    %cst_172 = arith.constant dense<0.000000e+00> : vector<2x192xf32>
    %308 = tpu.matmul %307, %168, %cst_172 {dimension_numbers = #tpu.dot_dimension_numbers<[1], [0], [0], [1], [0, 0, 1, 1], [], []>} : vector<2x64xbf16>, vector<64x192xbf16>, vector<2x192xf32> -> vector<2x192xf32>
    %309 = vector.extract_strided_slice %306 {offsets = [0, 0], sizes = [2, 128], strides = [1, 1]} : vector<2x192xf32> to vector<2x128xf32>
    %310 = vector.extract_strided_slice %308 {offsets = [0, 0], sizes = [2, 128], strides = [1, 1]} : vector<2x192xf32> to vector<2x128xf32>
    %311 = arith.addf %309, %310 : vector<2x128xf32>
    %312 = arith.negf %311 : vector<2x128xf32>
    %313 = math.exp %312 : vector<2x128xf32>
    %cst_173 = arith.constant 1.000000e+00 : f32
    %314 = vector.broadcast %cst_173 : f32 to vector<2x128xf32>
    %315 = arith.addf %314, %313 : vector<2x128xf32>
    %316 = arith.divf %314, %315 : vector<2x128xf32>
    %317 = vector.extract_strided_slice %316 {offsets = [0, 0], sizes = [2, 64], strides = [1, 1]} : vector<2x128xf32> to vector<2x64xf32>
    %318 = vector.extract_strided_slice %316 {offsets = [0, 64], sizes = [2, 64], strides = [1, 1]} : vector<2x128xf32> to vector<2x64xf32>
    %319 = vector.extract_strided_slice %306 {offsets = [0, 128], sizes = [2, 64], strides = [1, 1]} : vector<2x192xf32> to vector<2x64xf32>
    %320 = vector.extract_strided_slice %308 {offsets = [0, 128], sizes = [2, 64], strides = [1, 1]} : vector<2x192xf32> to vector<2x64xf32>
    %321 = vector.broadcast %169 : vector<1x64xf32> to vector<2x64xf32>
    %322 = arith.addf %320, %321 : vector<2x64xf32>
    %323 = arith.mulf %317, %322 : vector<2x64xf32>
    %324 = arith.addf %319, %323 : vector<2x64xf32>
    %325 = math.tanh %324 : vector<2x64xf32>
    %cst_174 = arith.constant 1.000000e+00 : f32
    %326 = vector.broadcast %cst_174 : f32 to vector<2x64xf32>
    %327 = arith.subf %326, %318 : vector<2x64xf32>
    %328 = arith.mulf %327, %325 : vector<2x64xf32>
    %329 = arith.mulf %318, %303 : vector<2x64xf32>
    %330 = arith.addf %328, %329 : vector<2x64xf32>
    %c10_175 = arith.constant 10 : index
    %c0_176 = arith.constant 0 : index
    %331 = vector.load %arg11[%c10_175, %c0_176] : memref<16x64xf32, #tpu.memory_space<vmem>>, vector<2x64xf32>
    tpu.vector_store %arg11[%c10_175, %c0_176], %330 {strides = array<i32>} : memref<16x64xf32, #tpu.memory_space<vmem>>, vector<2x64xf32>,
    %c4_177 = arith.constant 4 : index
    %c0_178 = arith.constant 0 : index
    %332 = vector.load %arg12[%c4_177, %c0_178] : memref<16x64xf32, #tpu.memory_space<vmem>>, vector<2x64xf32>
    tpu.vector_store %arg12[%c4_177, %c0_178], %330 {strides = array<i32>} : memref<16x64xf32, #tpu.memory_space<vmem>>, vector<2x64xf32>,
    %c12_179 = arith.constant 12 : index
    %c0_180 = arith.constant 0 : index
    %333 = vector.load %arg10[%c12_179, %c0_180] : memref<16x192xf32, #tpu.memory_space<vmem>>, vector<2x192xf32>
    %334 = arith.truncf %330 : vector<2x64xf32> to vector<2x64xbf16>
    %cst_181 = arith.constant dense<0.000000e+00> : vector<2x192xf32>
    %335 = tpu.matmul %334, %168, %cst_181 {dimension_numbers = #tpu.dot_dimension_numbers<[1], [0], [0], [1], [0, 0, 1, 1], [], []>} : vector<2x64xbf16>, vector<64x192xbf16>, vector<2x192xf32> -> vector<2x192xf32>
    %336 = vector.extract_strided_slice %333 {offsets = [0, 0], sizes = [2, 128], strides = [1, 1]} : vector<2x192xf32> to vector<2x128xf32>
    %337 = vector.extract_strided_slice %335 {offsets = [0, 0], sizes = [2, 128], strides = [1, 1]} : vector<2x192xf32> to vector<2x128xf32>
    %338 = arith.addf %336, %337 : vector<2x128xf32>
    %339 = arith.negf %338 : vector<2x128xf32>
    %340 = math.exp %339 : vector<2x128xf32>
    %cst_182 = arith.constant 1.000000e+00 : f32
    %341 = vector.broadcast %cst_182 : f32 to vector<2x128xf32>
    %342 = arith.addf %341, %340 : vector<2x128xf32>
    %343 = arith.divf %341, %342 : vector<2x128xf32>
    %344 = vector.extract_strided_slice %343 {offsets = [0, 0], sizes = [2, 64], strides = [1, 1]} : vector<2x128xf32> to vector<2x64xf32>
    %345 = vector.extract_strided_slice %343 {offsets = [0, 64], sizes = [2, 64], strides = [1, 1]} : vector<2x128xf32> to vector<2x64xf32>
    %346 = vector.extract_strided_slice %333 {offsets = [0, 128], sizes = [2, 64], strides = [1, 1]} : vector<2x192xf32> to vector<2x64xf32>
    %347 = vector.extract_strided_slice %335 {offsets = [0, 128], sizes = [2, 64], strides = [1, 1]} : vector<2x192xf32> to vector<2x64xf32>
    %348 = vector.broadcast %169 : vector<1x64xf32> to vector<2x64xf32>
    %349 = arith.addf %347, %348 : vector<2x64xf32>
    %350 = arith.mulf %344, %349 : vector<2x64xf32>
    %351 = arith.addf %346, %350 : vector<2x64xf32>
    %352 = math.tanh %351 : vector<2x64xf32>
    %cst_183 = arith.constant 1.000000e+00 : f32
    %353 = vector.broadcast %cst_183 : f32 to vector<2x64xf32>
    %354 = arith.subf %353, %345 : vector<2x64xf32>
    %355 = arith.mulf %354, %352 : vector<2x64xf32>
    %356 = arith.mulf %345, %330 : vector<2x64xf32>
    %357 = arith.addf %355, %356 : vector<2x64xf32>
    %c12_184 = arith.constant 12 : index
    %c0_185 = arith.constant 0 : index
    %358 = vector.load %arg11[%c12_184, %c0_185] : memref<16x64xf32, #tpu.memory_space<vmem>>, vector<2x64xf32>
    tpu.vector_store %arg11[%c12_184, %c0_185], %357 {strides = array<i32>} : memref<16x64xf32, #tpu.memory_space<vmem>>, vector<2x64xf32>,
    %c2_186 = arith.constant 2 : index
    %c0_187 = arith.constant 0 : index
    %359 = vector.load %arg12[%c2_186, %c0_187] : memref<16x64xf32, #tpu.memory_space<vmem>>, vector<2x64xf32>
    tpu.vector_store %arg12[%c2_186, %c0_187], %357 {strides = array<i32>} : memref<16x64xf32, #tpu.memory_space<vmem>>, vector<2x64xf32>,
    %c14_188 = arith.constant 14 : index
    %c0_189 = arith.constant 0 : index
    %360 = vector.load %arg10[%c14_188, %c0_189] : memref<16x192xf32, #tpu.memory_space<vmem>>, vector<2x192xf32>
    %361 = arith.truncf %357 : vector<2x64xf32> to vector<2x64xbf16>
    %cst_190 = arith.constant dense<0.000000e+00> : vector<2x192xf32>
    %362 = tpu.matmul %361, %168, %cst_190 {dimension_numbers = #tpu.dot_dimension_numbers<[1], [0], [0], [1], [0, 0, 1, 1], [], []>} : vector<2x64xbf16>, vector<64x192xbf16>, vector<2x192xf32> -> vector<2x192xf32>
    %363 = vector.extract_strided_slice %360 {offsets = [0, 0], sizes = [2, 128], strides = [1, 1]} : vector<2x192xf32> to vector<2x128xf32>
    %364 = vector.extract_strided_slice %362 {offsets = [0, 0], sizes = [2, 128], strides = [1, 1]} : vector<2x192xf32> to vector<2x128xf32>
    %365 = arith.addf %363, %364 : vector<2x128xf32>
    %366 = arith.negf %365 : vector<2x128xf32>
    %367 = math.exp %366 : vector<2x128xf32>
    %cst_191 = arith.constant 1.000000e+00 : f32
    %368 = vector.broadcast %cst_191 : f32 to vector<2x128xf32>
    %369 = arith.addf %368, %367 : vector<2x128xf32>
    %370 = arith.divf %368, %369 : vector<2x128xf32>
    %371 = vector.extract_strided_slice %370 {offsets = [0, 0], sizes = [2, 64], strides = [1, 1]} : vector<2x128xf32> to vector<2x64xf32>
    %372 = vector.extract_strided_slice %370 {offsets = [0, 64], sizes = [2, 64], strides = [1, 1]} : vector<2x128xf32> to vector<2x64xf32>
    %373 = vector.extract_strided_slice %360 {offsets = [0, 128], sizes = [2, 64], strides = [1, 1]} : vector<2x192xf32> to vector<2x64xf32>
    %374 = vector.extract_strided_slice %362 {offsets = [0, 128], sizes = [2, 64], strides = [1, 1]} : vector<2x192xf32> to vector<2x64xf32>
    %375 = vector.broadcast %169 : vector<1x64xf32> to vector<2x64xf32>
    %376 = arith.addf %374, %375 : vector<2x64xf32>
    %377 = arith.mulf %371, %376 : vector<2x64xf32>
    %378 = arith.addf %373, %377 : vector<2x64xf32>
    %379 = math.tanh %378 : vector<2x64xf32>
    %cst_192 = arith.constant 1.000000e+00 : f32
    %380 = vector.broadcast %cst_192 : f32 to vector<2x64xf32>
    %381 = arith.subf %380, %372 : vector<2x64xf32>
    %382 = arith.mulf %381, %379 : vector<2x64xf32>
    %383 = arith.mulf %372, %357 : vector<2x64xf32>
    %384 = arith.addf %382, %383 : vector<2x64xf32>
    %c14_193 = arith.constant 14 : index
    %c0_194 = arith.constant 0 : index
    %385 = vector.load %arg11[%c14_193, %c0_194] : memref<16x64xf32, #tpu.memory_space<vmem>>, vector<2x64xf32>
    tpu.vector_store %arg11[%c14_193, %c0_194], %384 {strides = array<i32>} : memref<16x64xf32, #tpu.memory_space<vmem>>, vector<2x64xf32>,
    %c0_195 = arith.constant 0 : index
    %c0_196 = arith.constant 0 : index
    %386 = vector.load %arg12[%c0_195, %c0_196] : memref<16x64xf32, #tpu.memory_space<vmem>>, vector<2x64xf32>
    tpu.vector_store %arg12[%c0_195, %c0_196], %384 {strides = array<i32>} : memref<16x64xf32, #tpu.memory_space<vmem>>, vector<2x64xf32>,
    %c0_197 = arith.constant 0 : index
    %c0_198 = arith.constant 0 : index
    %387 = vector.load %arg11[%c0_197, %c0_198] : memref<16x64xf32, #tpu.memory_space<vmem>>, vector<16x64xf32>
    %388 = arith.truncf %387 : vector<16x64xf32> to vector<16x64xbf16>
    %c0_199 = arith.constant 0 : index
    %c0_200 = arith.constant 0 : index
    %389 = vector.load %arg12[%c0_199, %c0_200] : memref<16x64xf32, #tpu.memory_space<vmem>>, vector<16x64xf32>
    %390 = arith.truncf %389 : vector<16x64xf32> to vector<16x64xbf16>
    %391 = vector.extract_strided_slice %388 {offsets = [0, 0], sizes = [12, 64], strides = [1, 1]} : vector<16x64xbf16> to vector<12x64xbf16>
    %392 = vector.extract_strided_slice %390 {offsets = [0, 0], sizes = [12, 64], strides = [1, 1]} : vector<16x64xbf16> to vector<12x64xbf16>
    %393 = vector.extract_strided_slice %388 {offsets = [2, 0], sizes = [12, 64], strides = [1, 1]} : vector<16x64xbf16> to vector<12x64xbf16>
    %394 = vector.extract_strided_slice %390 {offsets = [2, 0], sizes = [12, 64], strides = [1, 1]} : vector<16x64xbf16> to vector<12x64xbf16>
    %395 = vector.extract_strided_slice %388 {offsets = [4, 0], sizes = [12, 64], strides = [1, 1]} : vector<16x64xbf16> to vector<12x64xbf16>
    %396 = vector.extract_strided_slice %390 {offsets = [4, 0], sizes = [12, 64], strides = [1, 1]} : vector<16x64xbf16> to vector<12x64xbf16>
    %397 = tpu.concatenate %391, %392, %393, %394, %395, %396 in 1 : vector<12x64xbf16>, vector<12x64xbf16>, vector<12x64xbf16>, vector<12x64xbf16>, vector<12x64xbf16>, vector<12x64xbf16> -> vector<12x384xbf16>
    %c0_201 = arith.constant 0 : index
    %c0_202 = arith.constant 0 : index
    %398 = vector.load %arg6[%c0_201, %c0_202] : memref<384x32xbf16, #tpu.memory_space<vmem>>, vector<384x32xbf16>
    %cst_203 = arith.constant dense<0.000000e+00> : vector<12x32xf32>
    %399 = tpu.matmul %397, %398, %cst_203 {dimension_numbers = #tpu.dot_dimension_numbers<[1], [0], [0], [1], [0, 0, 1, 1], [], []>} : vector<12x384xbf16>, vector<384x32xbf16>, vector<12x32xf32> -> vector<12x32xf32>
    %c0_204 = arith.constant 0 : index
    %c0_205 = arith.constant 0 : index
    %400 = vector.load %arg7[%c0_204, %c0_205] : memref<1x32xf32, #tpu.memory_space<vmem>>, vector<1x32xf32>
    %401 = vector.broadcast %400 : vector<1x32xf32> to vector<12x32xf32>
    %402 = arith.addf %399, %401 : vector<12x32xf32>
    %403 = vector.extract_strided_slice %402 {offsets = [0, 0], sizes = [2, 32], strides = [1, 1]} : vector<12x32xf32> to vector<2x32xf32>
    %404 = vector.extract_strided_slice %402 {offsets = [2, 0], sizes = [2, 32], strides = [1, 1]} : vector<12x32xf32> to vector<2x32xf32>
    %405 = arith.maximumf %403, %404 : vector<2x32xf32>
    %406 = vector.extract_strided_slice %402 {offsets = [4, 0], sizes = [2, 32], strides = [1, 1]} : vector<12x32xf32> to vector<2x32xf32>
    %407 = arith.maximumf %405, %406 : vector<2x32xf32>
    %408 = vector.extract_strided_slice %402 {offsets = [6, 0], sizes = [2, 32], strides = [1, 1]} : vector<12x32xf32> to vector<2x32xf32>
    %409 = arith.maximumf %407, %408 : vector<2x32xf32>
    %410 = vector.extract_strided_slice %402 {offsets = [8, 0], sizes = [2, 32], strides = [1, 1]} : vector<12x32xf32> to vector<2x32xf32>
    %411 = arith.maximumf %409, %410 : vector<2x32xf32>
    %412 = vector.extract_strided_slice %402 {offsets = [10, 0], sizes = [2, 32], strides = [1, 1]} : vector<12x32xf32> to vector<2x32xf32>
    %413 = arith.maximumf %411, %412 : vector<2x32xf32>
    %cst_206 = arith.constant 0.000000e+00 : f32
    %414 = vector.broadcast %cst_206 : f32 to vector<2x32xf32>
    %415 = arith.maximumf %413, %414 : vector<2x32xf32>
    %c0_207 = arith.constant 0 : index
    %c0_208 = arith.constant 0 : index
    %416 = vector.load %arg8[%c0_207, %c0_208] : memref<2x32xf32, #tpu.memory_space<vmem>>, vector<2x32xf32>
    tpu.vector_store %arg8[%c0_207, %c0_208], %415 {strides = array<i32>} : memref<2x32xf32, #tpu.memory_space<vmem>>, vector<2x32xf32>,
    return
  }
}

</mosaic_0001>

<bundles_post_ra>
// kernel: cnn_rnn_forward.1
= control target key start
LH: loop header
LB: loop body
LE: loop exit
PB: predicated region body
PF: predicated region fallthrough
CT: control target
= control target key end

     0   :  { %s2410_s0 = inlined_call_operand.vmem [shape: s32[16], index: 0, kind: input, shape index: {}]   ;;  %s2411_s1 = inlined_call_operand.vmem [shape: f32[50,1,64], index: 1, kind: input, shape index: {}]   ;;  %s2412_s2 = inlined_call_operand.vmem [shape: bf16[128,192], index: 2, kind: input, shape index: {}]   ;;  %s2413_s3 = inlined_call_operand.vmem [shape: f32[1,192], index: 3, kind: input, shape index: {}]   ;;  %s2414_s4 = inlined_call_operand.vmem [shape: bf16[64,192], index: 4, kind: input, shape index: {}]   ;;  %s2415_s5 = inlined_call_operand.vmem [shape: f32[1,64], index: 5, kind: input, shape index: {}]   ;;  %s2416_s6 = inlined_call_operand.vmem [shape: bf16[384,32], index: 6, kind: input, shape index: {}]   ;;  %s2417_s7 = inlined_call_operand.vmem [shape: f32[1,32], index: 7, kind: input, shape index: {}]   ;;  %s2418_s8 = inlined_call_operand.hbm [shape: f32[2,32], index: 8, kind: output, shape index: {}]  }
   0x1   :  { %2423 = sst [smem:[#allocation12_spill]] %s2416_s6 }
   0x2   :  { %2424 = sst [smem:[#allocation13_spill]] %s2417_s7 }
   0x3   :  { %2425 = sst [smem:[#allocation14_spill]] %s2418_s8 }
   0x4   :  { %13 = vsyncpa [#allocation8], 0 }
   0x5   :  { %14 = vsyncpa [#allocation7], 0  ;;  %s21_s29 = sshll.u32 %s2410_s0, 4  ;;  %s22_s29 = int_to_ptr.vmem [resolvable:$true] %s21_s29 }
   0x6   :  { %s1821_s30 = scalar_lea.vmem %s22_s29, 16  ;;  %p1826_p1 = scmp.lt.s32.totalorder %s22_s29, %s22_s29 }
   0x7   :  { %p1822_p0 = scmp.ne.s32.totalorder %s22_s29, %s1821_s30  ;;  %p1827_p2 = scmp.lt.s32.totalorder %s1821_s30, %s1821_s30 }
   0x9   :  { %p1828_p3 = por %p1827_p2, %p1826_p1 }
   0xb   :  { %p1829_p4 = pnand %p1828_p3, %p1822_p0 }
   0xd   :  { %1832 = shalt.err (!%p1829_p4)
}
   0xe   :  { %s1859_s9 = smov [#allocation6]  }
   0xf   :  { %24 = dma.vmem_to_smem %s22_s29, 16, %s1859_s9, [#allocation8]  }
  0x10   :  { %1855 = dma.done.wait [#allocation8], 16  }
  0x11   :  { %1856 = vsyncadd [#allocation8], 4294967280 }
  0x12   :  { %42 = sfence }
  0x13   :  { %s1551_s10 = sld [smem:[#allocation6 + $0x6]]  ;;  %s1545_s11 = sld [smem:[#allocation6 + $0x7]]  ;;  %v1713_v0 = vld [vmem:[%s2412_s2 + $0x4] ss:$8 sps:$4 sm:$0xff]   ;;  %v1715_v1 = vld [vmem:[%s2412_s2] ss:$8 sps:$4 sm:$0xff]  }
  0x14   :  { %s1554_s12 = sld [smem:[#allocation6 + $0xe]]  ;;  %s1548_s0 = sld [smem:[#allocation6 + $0xf]]  ;;  %412 = vmatprep.subr.bf16.mxu0 %v1713_v0  ;;  %v1716_v2 = vld [vmem:[%s2412_s2 + $0x14] ss:$8 sps:$4 sm:$0xff]   ;;  %v1718_v3 = vld [vmem:[%s2412_s2 + $0x10] ss:$8 sps:$4 sm:$0xff]  }
  0x15   :  { %s1560_s15 = sld [smem:[#allocation6 + $0xd]]  ;;  %413 = vmatpush1.bf16.msra.mxu0 %v1715_v1  ;;  %s1566_s19 = sld [smem:[#allocation6 + $0xc]]  ;;  %v1719_v7 = vld [vmem:[%s2412_s2 + $0x24] ss:$8 sps:$4 sm:$0xff]   ;;  %v1721_v11 = vld [vmem:[%s2412_s2 + $0x20] ss:$8 sps:$4 sm:$0xff]  }
  0x16   :  { %s1557_s18 = sld [smem:[#allocation6 + $0x5]]  ;;  %s1563_s25 = sld [smem:[#allocation6 + $0x4]]  ;;  %414 = vmatprep.subr.bf16.mxu0 %v1716_v2  ;;  %v1722_v13 = vld [vmem:[%s2412_s2 + $0x34] ss:$8 sps:$4 sm:$0xff]   ;;  %v1724_v15 = vld [vmem:[%s2412_s2 + $0x30] ss:$8 sps:$4 sm:$0xff]  }
  0x17   :  { %s1572_s26 = sld [smem:[#allocation6 + $0xb]]  ;;  %s1578_s9 = sld [smem:[#allocation6 + $0xa]]  ;;  %v1725_v16 = vld [vmem:[%s2412_s2 + $0x44] ss:$8 sps:$4 sm:$0xff]   ;;  %v1727_v18 = vld [vmem:[%s2412_s2 + $0x40] ss:$8 sps:$4 sm:$0xff]  }
  0x18   :  { %s1569_s29 = sld [smem:[#allocation6 + $0x3]]  ;;  %s1575_s17 = sld [smem:[#allocation6 + $0x2]]  ;;  %v1728_v20 = vld [vmem:[%s2412_s2 + $0x54] ss:$8 sps:$4 sm:$0xff]   ;;  %v2039_v23 = vld [vmem:[%s2414_s4 + $0x4] ss:$8 sps:$4 sm:$0xff]  }
  0x19   :  { %s1925_s24 = scalar_lea.vmem %s2411_s1, %s1551_s10  ;;  %s1934_s30 = scalar_lea.vmem %s2411_s1, %s1545_s11  ;;  %415 = vmatpush1.bf16.msra.mxu0 %v1718_v3  ;;  %v1730_v24 = vld [vmem:[%s2412_s2 + $0x50] ss:$8 sps:$4 sm:$0xff]   ;;  %v1733_v25 = vld [vmem:[%s2412_s2 + $0x64] ss:$8 sps:$4 sm:$0xff]   ;;  %v2056_v26 = vld [vmem:[%s2414_s4] ss:$8 sps:$4 sm:$0xff]   ;;  %513 = vmatprep.subr.bf16.mxu1 %v2039_v23 }
  0x1a   :  { %v1552_v4 = vld [vmem:[%s1925_s24] ss:$0 sm:$0xff]  ;;  %s1939_s14 = scalar_lea.vmem %s2411_s1, %s1554_s12  ;;  %s2420_s10 = smov 64   ;;  %416 = vmatprep.subr.bf16.mxu0 %v1719_v7  ;;  %v2062_v27 = vld [vmem:[%s2414_s4 + $0x14] ss:$8 sps:$4 sm:$0xff]   ;;  %514 = vmatpush1.bf16.msra.mxu1 %v2056_v26  ;;  %v1861_v31 = vmov 0  }
  0x1b   :  { %88 = vrot.lane.b32.xlu1 %v1552_v4, %s2420_s10  ;;  %v1546_v5 = vld [vmem:[%s1934_s30] ss:$0 sm:$0xff]  ;;  %s1946_s20 = scalar_lea.vmem %s2411_s1, %s1548_s0  ;;  %s1957_s23 = scalar_lea.vmem %s2411_s1, %s1560_s15  ;;  %v2072_v30 = vld [vmem:[%s2414_s4 + $0x10] ss:$8 sps:$4 sm:$0xff]   ;;  %444 = vmatprep.mubr.bf16.mxu0 %v1861_v31  ;;  %v1739_v33 = vld [vmem:[%s2412_s2 + $0x74] ss:$8 sps:$4 sm:$0xff]  }
  0x1c   :  { %55 = vrot.lane.b32.xlu0 %v1546_v5, %s2420_s10  ;;  %v1555_v6 = vld [vmem:[%s1939_s14] ss:$0 sm:$0xff]  ;;  %s1962_s28 = scalar_lea.vmem %s2411_s1, %s1557_s18  ;;  %s1970_s15 = scalar_lea.vmem %s2411_s1, %s1566_s19  ;;  %515 = vmatprep.subr.bf16.mxu1 %v2062_v27  ;;  %v2097_v34 = vld [vmem:[%s2414_s4 + $0x24] ss:$8 sps:$4 sm:$0xff]   ;;  %v1742_v36 = vld [vmem:[%s2412_s2 + $0x70] ss:$8 sps:$4 sm:$0xff]  }
  0x1d   :  { %v1549_v8 = vld [vmem:[%s1946_s20] ss:$0 sm:$0xff]  ;;  %s1976_s21 = scalar_lea.vmem %s2411_s1, %s1563_s25  ;;  %s1584_s27 = sld [smem:[#allocation6 + $0x9]]  ;;  %417 = vmatpush1.bf16.msra.mxu0 %v1721_v11  ;;  %545 = vmatprep.mubr.bf16.mxu1 %v1861_v31  ;;  %v2118_v39 = vld [vmem:[%s2414_s4 + $0x34] ss:$8 sps:$4 sm:$0xff]   ;;  %vm58_vm0 = vcmask 523264  }
  0x1e   :  { %v1561_v9 = vld [vmem:[%s1957_s23] ss:$0 sm:$0xff]  ;;  %s1581_s13 = sld [smem:[#allocation6 + $0x1]]  ;;  %s1994_s12 = scalar_lea.vmem %s2411_s1, %s1572_s26  ;;  %418 = vmatprep.subr.bf16.mxu0 %v1722_v13  ;;  %516 = vmatpush1.bf16.msra.mxu1 %v2072_v30  ;;  %v2123_v40 = vld [vmem:[%s2414_s4 + $0x30] ss:$8 sps:$4 sm:$0xff]   ;;  %vm583_vm1 = vcmask 517120  }
  0x1f   :  { %104 = vrot.lane.b32.xlu1 %v1555_v6, %s2420_s10  ;;  %v1558_v10 = vld [vmem:[%s1962_s28] ss:$0 sm:$0xff]  ;;  %s2426_s7 = smov 64   ;;  %s2008_s11 = scalar_lea.vmem %s2411_s1, %s1578_s9  ;;  %517 = vmatprep.subr.bf16.mxu1 %v2097_v34  ;;  %vm752_vm2 = vcmask 521220   ;;  %vm667_vm3 = vcmask 519170   ;;  %vm837_vm4 = vcmask 523270  }
  0x20   :  { %72 = vrot.lane.b32.xlu0 %v1549_v8, %s2420_s10  ;;  %v1567_v12 = vld [vmem:[%s1970_s15] ss:$0 sm:$0xff]  ;;  %s2010_s26 = sld [smem:[#allocation6 + $0x8]]  ;;  %s2017_s22 = scalar_lea.vmem %s2411_s1, %s1575_s17  ;;  %vm1863_vm5 = vmmov 0   ;;  %vm1496_vm6 = vcmask 254976  }
  0x21   :  { %v1564_v14 = vld [vmem:[%s1976_s21] ss:$0 sm:$0xff]  ;;  %419 = vmatpush1.bf16.msra.mxu0 %v1724_v15 }
  0x22   :  { %v1573_v17 = vld [vmem:[%s1994_s12] ss:$0 sm:$0xff]  ;;  %420 = vmatprep.subr.bf16.mxu0 %v1725_v16 }
  0x23   :  { %136 = vrot.lane.b32.xlu1 %v1561_v9, %s2420_s10  ;;  %v1579_v21 = vld [vmem:[%s2008_s11] ss:$0 sm:$0xff]  ;;  %s2034_s8 = scalar_lea.vmem %s2411_s1, %s1584_s27 }
  0x24   :  { %120 = vrot.lane.b32.xlu0 %v1558_v10, %s2420_s10  ;;  %s2002_s10 = scalar_lea.vmem %s2411_s1, %s1569_s29  ;;  %s2019_s29 = sld [smem:[#allocation6]]  ;;  %v1576_v22 = vld [vmem:[%s2017_s22] ss:$0 sm:$0xff] }
  0x25   :  { %v1570_v19 = vld [vmem:[%s2002_s10] ss:$0 sm:$0xff]  ;;  %s2045_s9 = scalar_lea.vmem %s2411_s1, %s1581_s13  ;;  %421 = vmatpush1.bf16.msra.mxu0 %v1727_v18 }
  0x26   :  { %422 = vmatprep.subr.bf16.mxu0 %v1728_v20  ;;  %v1585_v28 = vld [vmem:[%s2034_s8] ss:$0 sm:$0xff]  ;;  %s2081_s18 = scalar_lea.vmem %s2411_s1, %s2010_s26 }
  0x27   :  { %168 = vrot.lane.b32.xlu1 %v1567_v12, %s2426_s7  ;;  %v1736_v29 = vld [vmem:[%s2412_s2 + $0x60] ss:$8 sps:$4 sm:$0xff]  }
  0x28   :  { %152 = vrot.lane.b32.xlu0 %v1564_v14, %s2426_s7  ;;  %v1582_v32 = vld [vmem:[%s2045_s9] ss:$0 sm:$0xff] }
  0x29   :  { %423 = vmatpush1.bf16.msra.mxu0 %v1730_v24  ;;  %v1590_v35 = vld [vmem:[%s2081_s18] ss:$0 sm:$0xff] }
  0x2a   :  { %s2092_s17 = scalar_lea.vmem %s2411_s1, %s2019_s29  ;;  %424 = vmatprep.subr.bf16.mxu0 %v1733_v25  ;;  %v2112_v38 = vld [vmem:[%s2414_s4 + $0x20] ss:$8 sps:$4 sm:$0xff]   ;;  %s2428_s1 = sld [smem:[#allocation13_spill]] }
  0x2b   :  { %200 = vrot.lane.b32.xlu1 %v1573_v17, %s2426_s7  ;;  %v1587_v37 = vld [vmem:[%s2092_s17] ss:$0 sm:$0xff]  ;;  %518 = vmatpush1.bf16.msra.mxu1 %v2112_v38  ;;  %s1864_s29 = smov [#allocation9]  }
  0x2c   :  { %184 = vrot.lane.b32.xlu0 %v1570_v19, %s2426_s7  ;;  %519 = vmatprep.subr.bf16.mxu1 %v2118_v39  ;;  %v79_v41 = vld [vmem:[%s2045_s9] sm:$0x1]  ;;  %s1504_s13 = sshll.u32 %s1864_s29, 4  ;;  %s1505_s13 = int_to_ptr.vmem [resolvable:$true] %s1504_s13 }
  0x2d   :  { %425 = vmatpush1.bf16.msra.mxu0 %v1736_v29  ;;  %v46_v42 = vld [vmem:[%s2092_s17] sm:$0x1]  ;;  %s1833_s0 = scalar_lea.vmem %s1505_s13, 32  ;;  %p1838_p6 = scmp.lt.s32.totalorder %s1505_s13, %s1505_s13 }
  0x2e   :  { %426 = vmatprep.subr.bf16.mxu0 %v1739_v33  ;;  %v95_v47 = vld [vmem:[%s2034_s8] sm:$0x1]  ;;  %p1834_p5 = scmp.ne.s32.totalorder %s1505_s13, %s1833_s0  ;;  %p1839_p7 = scmp.lt.s32.totalorder %s1833_s0, %s1833_s0 }
  0x2f   :  { %232 = vrot.lane.b32.xlu1 %v1579_v21, %s2426_s7  ;;  %520 = vmatpush1.bf16.msra.mxu1 %v2123_v40  ;;  %v63_v48 = vld [vmem:[%s2081_s18] sm:$0x1] }
  0x30   :  { %216 = vrot.lane.b32.xlu0 %v1576_v22, %s2426_s7  ;;  %595 = vmatprep.subr.bf16.mxu1 %v2039_v23  ;;  %v127_v53 = vld [vmem:[%s2008_s11] sm:$0x1]  ;;  %p1840_p8 = por %p1839_p7, %p1838_p6 }
  0x31   :  { %427 = vmatpush1.bf16.msra.mxu0 %v1742_v36  ;;  %v111_v54 = vld [vmem:[%s2017_s22] sm:$0x1] }
  0x32   :  { %680 = vmatprep.subr.bf16.mxu0 %v2039_v23  ;;  %546 = vmatmul.mubr.bf16.vlgmr.msra.gmra.mrb[0].mxu1 %v1861_v31  ;;  %v159_v59 = vld [vmem:[%s1994_s12] sm:$0x1]  ;;  %p1841_p9 = pnand %p1840_p8, %p1834_p5 }
  0x33   :  { %264 = vrot.lane.b32.xlu1 %v1585_v28, %s2426_s7  ;;  %596 = vmatpush1.bf16.msra.mxu1 %v2056_v26  ;;  %v143_v60 = vld [vmem:[%s2002_s10] sm:$0x1]  ;;  %s2427_s10 = sld [smem:[#allocation12_spill]] }
  0x34   :  { %248 = vrot.lane.b32.xlu0 %v1582_v32, %s2426_s7  ;;  %627 = vmatprep.mubr.bf16.mxu1 %v1861_v31  ;;  %v191_v1 = vld [vmem:[%s1970_s15] sm:$0x1] }
  0x35   :  { %597 = vmatprep.subr.bf16.mxu1 %v2062_v27  ;;  %v175_v2 = vld [vmem:[%s1976_s21] sm:$0x1] }
  0x36   :  { %v223_v7 = vld [vmem:[%s1957_s23] sm:$0x1] }
  0x37   :  { %296 = vrot.lane.b32.xlu1 %v1590_v35, %s2426_s7  ;;  %598 = vmatpush1.bf16.msra.mxu1 %v2072_v30  ;;  %v207_v8 = vld [vmem:[%s1962_s28] sm:$0x1] }
  0x38   :  { %280 = vrot.lane.b32.xlu0 %v1587_v37, %s2426_s7  ;;  %599 = vmatprep.subr.bf16.mxu1 %v2097_v34  ;;  %v255_v13 = vld [vmem:[%s1939_s14] sm:$0x1] }
  0x39   :  { %v239_v14 = vld [vmem:[%s1925_s24] sm:$0x1] }
  0x3a   :  { %v287_v19 = vld [vmem:[%s1946_s20] sm:$0x1] }
  0x3b   :  { %600 = vmatpush1.bf16.msra.mxu1 %v2112_v38  ;;  %v271_v20 = vld [vmem:[%s1934_s30] sm:$0x1] }
  0x3c   :  { %601 = vmatprep.subr.bf16.mxu1 %v2118_v39 }
  0x3f   :  { %602 = vmatpush1.bf16.msra.mxu1 %v2123_v40 }
  0x40   :  { %765 = vmatprep.subr.bf16.mxu1 %v2039_v23 }
  0x8d   :  { %v89_v43 = vpop.permute.xlu1 %88 }
  0x8e   :  { %v91_v44 = vsel %vm58_vm0, %v79_v41, %v89_v43  ;;  %v56_v45 = vpop.permute.xlu0 %55  ;;  %v322_v41 = vlaneseq }
  0x8f   :  { %92 = vst [vmem:[#allocation2 + $0x2] sm:$0x1] %v91_v44  ;;  %v59_v46 = vsel %vm58_vm0, %v46_v42, %v56_v45  ;;  %v320_v44 = vld [vmem:[%s2413_s3] sm:$0x3] }
  0x90   :  { %60 = vst [vmem:[#allocation2] sm:$0x1] %v59_v46  ;;  %v323_v42 = vshrl.u32 %v322_v41, 7 }
  0x91   :  { %v105_v49 = vpop.permute.xlu1 %104 }
  0x92   :  { %v107_v50 = vsel %vm58_vm0, %v95_v47, %v105_v49  ;;  %v73_v51 = vpop.permute.xlu0 %72  ;;  %v324_v43 = vsub.s32 0, %v323_v42  ;;  %v328_v45 = vsub.s32 1, %v323_v42 }
  0x93   :  { %108 = vst [vmem:[#allocation2 + $0x3] sm:$0x1] %v107_v50  ;;  %v75_v52 = vsel %vm58_vm0, %v63_v48, %v73_v51 }
  0x94   :  { %76 = vst [vmem:[#allocation2 + $0x1] sm:$0x1] %v75_v52  ;;  %v325_v46 = vrot.slane %v320_v44, %v324_v43  ;;  %v329_v47 = vrot.slane %v320_v44, %v328_v45 }
  0x95   :  { %v137_v55 = vpop.permute.xlu1 %136 }
  0x96   :  { %v139_v56 = vsel %vm58_vm0, %v127_v53, %v137_v55  ;;  %v121_v57 = vpop.permute.xlu0 %120 }
  0x97   :  { %140 = vst [vmem:[#allocation2 + $0x5] sm:$0x1] %v139_v56  ;;  %v123_v58 = vsel %vm58_vm0, %v111_v54, %v121_v57 }
  0x98   :  { %124 = vst [vmem:[#allocation2 + $0x4] sm:$0x1] %v123_v58 }
  0x99   :  { %v169_v61 = vpop.permute.xlu1 %168 }
  0x9a   :  { %v171_v62 = vsel %vm58_vm0, %v159_v59, %v169_v61  ;;  %v153_v63 = vpop.permute.xlu0 %152  ;;  %v2190_v61 = vld [vmem:[%s2415_s5] ss:$0 sm:$0xff] }
  0x9b   :  { %172 = vst [vmem:[#allocation2 + $0x7] sm:$0x1] %v171_v62  ;;  %v155_v0 = vsel %vm58_vm0, %v143_v60, %v153_v63 }
  0x9c   :  { %156 = vst [vmem:[#allocation2 + $0x6] sm:$0x1] %v155_v0 }
  0x9d   :  { %v201_v3 = vpop.permute.xlu1 %200 }
  0x9e   :  { %v203_v4 = vsel %vm58_vm0, %v191_v1, %v201_v3  ;;  %v185_v5 = vpop.permute.xlu0 %184 }
  0x9f   :  { %204 = vst [vmem:[#allocation2 + $0x9] sm:$0x1] %v203_v4  ;;  %v187_v6 = vsel %vm58_vm0, %v175_v2, %v185_v5 }
  0xa0   :  { %188 = vst [vmem:[#allocation2 + $0x8] sm:$0x1] %v187_v6 }
  0xa1   :  { %v233_v9 = vpop.permute.xlu1 %232 }
  0xa2   :  { %v235_v10 = vsel %vm58_vm0, %v223_v7, %v233_v9  ;;  %v217_v11 = vpop.permute.xlu0 %216 }
  0xa3   :  { %236 = vst [vmem:[#allocation2 + $0xb] sm:$0x1] %v235_v10  ;;  %v219_v12 = vsel %vm58_vm0, %v207_v8, %v217_v11  ;;  %v301_v28 = vld [vmem:[#allocation2] sm:$0xff] }
  0xa4   :  { %220 = vst [vmem:[#allocation2 + $0xa] sm:$0x1] %v219_v12 }
  0xa5   :  { %v265_v15 = vpop.permute.xlu1 %264 }
  0xa6   :  { %v267_v16 = vsel %vm58_vm0, %v255_v13, %v265_v15  ;;  %v249_v17 = vpop.permute.xlu0 %248 }
  0xa7   :  { %268 = vst [vmem:[#allocation2 + $0xd] sm:$0x1] %v267_v16  ;;  %v251_v18 = vsel %vm58_vm0, %v239_v14, %v249_v17 }
  0xa8   :  { %252 = vst [vmem:[#allocation2 + $0xc] sm:$0x1] %v251_v18 }
  0xa9   :  { %v297_v21 = vpop.permute.xlu1 %296 }
  0xaa   :  { %v299_v22 = vsel %vm58_vm0, %v287_v19, %v297_v21  ;;  %v281_v24 = vpop.permute.xlu0 %280 }
  0xab   :  { %300 = vst [vmem:[#allocation2 + $0xf] sm:$0x1] %v299_v22  ;;  %v283_v25 = vsel %vm58_vm0, %v271_v20, %v281_v24 }
  0xac   :  { %284 = vst [vmem:[#allocation2 + $0xe] sm:$0x1] %v283_v25 }
  0xb3   :  { %v302_v29 = vld [vmem:[#allocation2 + $0x8] sm:$0xff] }
  0xb4   :  { %v303_v32 = vpack.c.bf16 %v302_v29, %v301_v28 }
  0xb6   :  { %445 = vmatmul.mubr.bf16.vlgmr.msra.gmra.mrb[0].mxu0 %v303_v32 }
  0xb7   :  { %681 = vmatpush1.bf16.msra.mxu0 %v2056_v26  ;;  %712 = vmatprep.mubr.bf16.mxu0 %v1861_v31 }
  0xb8   :  { %682 = vmatprep.subr.bf16.mxu0 %v2062_v27 }
  0xbb   :  { %683 = vmatpush1.bf16.msra.mxu0 %v2072_v30 }
  0xbc   :  { %684 = vmatprep.subr.bf16.mxu0 %v2097_v34 }
  0xbf   :  { %685 = vmatpush1.bf16.msra.mxu0 %v2112_v38 }
  0xc0   :  { %686 = vmatprep.subr.bf16.mxu0 %v2118_v39 }
  0xc3   :  { %687 = vmatpush1.bf16.msra.mxu0 %v2123_v40 }
  0xc4   :  { %850 = vmatprep.subr.bf16.mxu0 %v2039_v23 }
 0x105   :  { %v547_v33 = vpop.f32.mrb[0].mxu1 }
 0x106   :  { %v549_v35 = vpop.f32.mrb[1].mxu1 }
 0x107   :  { %v551_v36 = vpop.f32.mrb[2].mxu1  ;;  %v567_v62 = vadd.f32 %v2190_v61, %v549_v35 }
 0x108   :  { %v552_v37 = vpop.f32.mrb[3].mxu1 }
 0x189   :  { %v446_v48 = vpop.f32.mrb[0].mxu0 }
 0x18a   :  { %v447_v49 = vadd.f32 %v446_v48, %v325_v46  ;;  %v448_v50 = vpop.f32.mrb[1].mxu0 }
 0x18b   :  { %v449_v51 = vadd.f32 %v448_v50, %v329_v47  ;;  %v450_v52 = vpop.f32.mrb[2].mxu0 }
 0x18c   :  { %455 = vst [vmem:[#allocation3] sm:$0xff] %v447_v49  ;;  %v451_v53 = vadd.f32 %v450_v52, %v325_v46  ;;  %v452_v54 = vpop.f32.mrb[3].mxu0 }
 0x18d   :  { %456 = vst.msk [vmem:[#allocation3 + $0x8] sm:$0xff] %vm58_vm0, %v449_v51  ;;  %v453_v55 = vadd.f32 %v452_v54, %v329_v47 }
 0x18e   :  { %457 = vst [vmem:[#allocation3 + $0x10] sm:$0xff] %v451_v53 }
 0x18f   :  { %458 = vst.msk [vmem:[#allocation3 + $0x18] sm:$0xff] %vm58_vm0, %v453_v55 }
 0x193   :  { %v468_v56 = vld [vmem:[#allocation3] sm:$0x3]  ;;  %v586_v14 = vld [vmem:[#allocation3] sm:$0xc]  ;;  %v670_v49 = vld [vmem:[#allocation3] sm:$0x30] }
 0x194   :  { %v554_v57 = vadd.f32 %v547_v33, %v468_v56  ;;  %v469_v1 = vld [vmem:[#allocation3 + $0x8] sm:$0x3]  ;;  %v587_v28 = vld [vmem:[#allocation3 + $0x8] sm:$0xc] }
 0x196   :  { %v1615_v58 = vmul.f32 -1.442695, %v554_v57 }
 0x198   :  { %1773 = vpow2.f32 %v1615_v58 }
 0x1a2   :  { %v1774_v59 = vpop.eup %1773 }
 0x1a3   :  { %v558_v60 = vadd.f32 1.0, %v1774_v59 }
 0x1a5   :  { %1775 = vrcp.f32 %v558_v60  ;;  %v671_v60 = vld [vmem:[#allocation3 + $0x8] sm:$0x30] }
 0x1af   :  { %v1776_v63 = vpop.eup %1775 }
 0x1b0   :  { %v568_v0 = vmul.f32 %v1776_v63, %v567_v62  ;;  %v571_v4 = vsub.f32 1.0, %v1776_v63  ;;  %v577_v6 = vmul.f32 0.0, %v1776_v63 }
 0x1b2   :  { %v569_v2 = vadd.f32 %v568_v0, %v469_v1 }
 0x1b4   :  { %1777 = vtanh.f32 %v569_v2 }
 0x1be   :  { %v1778_v3 = vpop.eup %1777 }
 0x1bf   :  { %573 = vrot.lane.b32.xlu0 %v1778_v3, %s2426_s7 }
 0x231   :  { %v574_v5 = vpop.permute.xlu0 %573 }
 0x232   :  { %v576_v7 = vmul.f32 %v574_v5, %v571_v4 }
 0x234   :  { %v2194_v8 = vadd.f32 %v577_v6, %v576_v7 }
 0x236   :  { %v588_v9 = vpack.c.bf16 %v2194_v8, %v2194_v8  ;;  %v659_v35 = vrot.slane %v2194_v8, 6 }
 0x238   :  { %590 = vrot.lane.b32.xlu1 %v588_v9, %s2426_s7 }
 0x2aa   :  { %v591_v10 = vpop.permute.xlu1 %590 }
 0x2ab   :  { %1617 = vmatmul.mubr.msk.bf16.vlgmr.msra.gmra.mrb[4].mxu1 %vm58_vm0, %v591_v10 }
 0x2ac   :  { %766 = vmatpush1.bf16.msra.mxu1 %v2056_v26  ;;  %797 = vmatprep.mubr.bf16.mxu1 %v1861_v31 }
 0x2ad   :  { %767 = vmatprep.subr.bf16.mxu1 %v2062_v27 }
 0x2b0   :  { %768 = vmatpush1.bf16.msra.mxu1 %v2072_v30 }
 0x2b1   :  { %769 = vmatprep.subr.bf16.mxu1 %v2097_v34 }
 0x2b4   :  { %770 = vmatpush1.bf16.msra.mxu1 %v2112_v38 }
 0x2b5   :  { %771 = vmatprep.subr.bf16.mxu1 %v2118_v39 }
 0x2b8   :  { %772 = vmatpush1.bf16.msra.mxu1 %v2123_v40 }
 0x2b9   :  { %927 = vmatprep.subr.bf16.mxu1 %v2039_v23 }
 0x37e   :  { %v629_v11 = vpop.f32.mrb[4].mxu1 }
 0x37f   :  { %v637_v12 = vrot.slane %v629_v11, 6  ;;  %v631_v13 = vpop.f32.mrb[5].mxu1 }
 0x380   :  { %v633_v15 = vpop.f32.mrb[6].mxu1  ;;  %v646_v21 = vadd.f32 %v2190_v61, %v631_v13  ;;  %v755_v13 = vld [vmem:[#allocation3] sm:$0xc0] }
 0x381   :  { %v639_v16 = vadd.f32 %v637_v12, %v586_v14  ;;  %v634_v17 = vpop.f32.mrb[7].mxu1 }
 0x382   :  { %v648_v22 = vrot.slane %v646_v21, 6 }
 0x383   :  { %v1618_v18 = vmul.f32 -1.442695, %v639_v16 }
 0x385   :  { %1779 = vpow2.f32 %v1618_v18 }
 0x38f   :  { %v1780_v19 = vpop.eup %1779 }
 0x390   :  { %v643_v20 = vadd.f32 1.0, %v1780_v19 }
 0x392   :  { %1781 = vrcp.f32 %v643_v20 }
 0x39c   :  { %v1782_v24 = vpop.eup %1781 }
 0x39d   :  { %v650_v25 = vmul.f32 %v1782_v24, %v648_v22  ;;  %v653_v33 = vsub.f32 1.0, %v1782_v24  ;;  %v661_v37 = vmul.f32 %v1782_v24, %v659_v35 }
 0x39f   :  { %v651_v29 = vadd.f32 %v650_v25, %v587_v28  ;;  %v756_v25 = vld [vmem:[#allocation3 + $0x8] sm:$0xc0] }
 0x3a1   :  { %1783 = vtanh.f32 %v651_v29 }
 0x3ab   :  { %v1784_v32 = vpop.eup %1783 }
 0x3ac   :  { %655 = vrot.lane.b32.xlu0 %v1784_v32, %s2426_s7 }
 0x41e   :  { %v656_v36 = vpop.permute.xlu0 %655 }
 0x41f   :  { %v658_v41 = vmul.f32 %v656_v36, %v653_v33 }
 0x421   :  { %v2212_v42 = vadd.f32 %v661_v37, %v658_v41 }
 0x423   :  { %v672_v43 = vpack.c.bf16 %v2212_v42, %v2212_v42  ;;  %v744_v1 = vrot.slane %v2212_v42, 6 }
 0x425   :  { %v674_v44 = vrot.slane %v672_v43, 1 }
 0x427   :  { %675 = vrot.lane.b32.xlu1 %v674_v44, %s2426_s7 }
 0x499   :  { %v676_v45 = vpop.permute.xlu1 %675 }
 0x49a   :  { %1619 = vmatmul.mubr.msk.bf16.vlgmr.msra.gmra.mrb[4].mxu0 %vm58_vm0, %v676_v45  ;;  %v840_v45 = vld [vmem:[#allocation3 + $0x10] sm:$0x3] }
 0x49b   :  { %851 = vmatpush1.bf16.msra.mxu0 %v2056_v26  ;;  %882 = vmatprep.mubr.bf16.mxu0 %v1861_v31 }
 0x49c   :  { %852 = vmatprep.subr.bf16.mxu0 %v2062_v27 }
 0x49f   :  { %853 = vmatpush1.bf16.msra.mxu0 %v2072_v30 }
 0x4a0   :  { %854 = vmatprep.subr.bf16.mxu0 %v2097_v34 }
 0x4a3   :  { %855 = vmatpush1.bf16.msra.mxu0 %v2112_v38 }
 0x4a4   :  { %856 = vmatprep.subr.bf16.mxu0 %v2118_v39 }
 0x4a7   :  { %857 = vmatpush1.bf16.msra.mxu0 %v2123_v40 }
 0x4a8   :  { %1011 = vmatprep.subr.bf16.mxu0 %v2039_v23 }
 0x56d   :  { %v714_v46 = vpop.f32.mrb[4].mxu0 }
 0x56e   :  { %v722_v47 = vrot.slane %v714_v46, 4  ;;  %v716_v48 = vpop.f32.mrb[5].mxu0 }
 0x56f   :  { %v718_v50 = vpop.f32.mrb[6].mxu0  ;;  %v731_v56 = vadd.f32 %v2190_v61, %v716_v48 }
 0x570   :  { %v724_v51 = vadd.f32 %v722_v47, %v670_v49  ;;  %v719_v52 = vpop.f32.mrb[7].mxu0 }
 0x571   :  { %v733_v57 = vrot.slane %v731_v56, 4 }
 0x572   :  { %v1620_v53 = vmul.f32 -1.442695, %v724_v51 }
 0x574   :  { %1785 = vpow2.f32 %v1620_v53 }
 0x57e   :  { %v1786_v54 = vpop.eup %1785 }
 0x57f   :  { %v728_v55 = vadd.f32 1.0, %v1786_v54 }
 0x581   :  { %1787 = vrcp.f32 %v728_v55 }
 0x58b   :  { %v1788_v58 = vpop.eup %1787 }
 0x58c   :  { %v735_v59 = vmul.f32 %v1788_v58, %v733_v57  ;;  %v738_v0 = vsub.f32 1.0, %v1788_v58  ;;  %v746_v3 = vmul.f32 %v1788_v58, %v744_v1  ;;  %v841_v57 = vld [vmem:[#allocation3 + $0x18] sm:$0x3] }
 0x58e   :  { %v736_v62 = vadd.f32 %v735_v59, %v671_v60 }
 0x590   :  { %1789 = vtanh.f32 %v736_v62 }
 0x59a   :  { %v1790_v63 = vpop.eup %1789 }
 0x59b   :  { %740 = vrot.lane.b32.xlu0 %v1790_v63, %s2426_s7 }
 0x60d   :  { %v741_v2 = vpop.permute.xlu0 %740 }
 0x60e   :  { %v743_v4 = vmul.f32 %v741_v2, %v738_v0 }
 0x610   :  { %v2230_v5 = vadd.f32 %v746_v3, %v743_v4 }
 0x612   :  { %v757_v6 = vpack.c.bf16 %v2230_v5, %v2230_v5  ;;  %v829_v32 = vrot.slane %v2230_v5, 6 }
 0x614   :  { %v759_v7 = vrot.slane %v757_v6, 2 }
 0x616   :  { %760 = vrot.lane.b32.xlu1 %v759_v7, %s2426_s7 }
 0x688   :  { %v761_v9 = vpop.permute.xlu1 %760 }
 0x689   :  { %1621 = vmatmul.mubr.msk.bf16.vlgmr.msra.gmra.mrb[8].mxu1 %vm58_vm0, %v761_v9 }
 0x68a   :  { %928 = vmatpush1.bf16.msra.mxu1 %v2056_v26  ;;  %959 = vmatprep.mubr.bf16.mxu1 %v1861_v31 }
 0x68b   :  { %929 = vmatprep.subr.bf16.mxu1 %v2062_v27 }
 0x68e   :  { %930 = vmatpush1.bf16.msra.mxu1 %v2072_v30 }
 0x68f   :  { %931 = vmatprep.subr.bf16.mxu1 %v2097_v34 }
 0x692   :  { %932 = vmatpush1.bf16.msra.mxu1 %v2112_v38 }
 0x693   :  { %933 = vmatprep.subr.bf16.mxu1 %v2118_v39 }
 0x696   :  { %934 = vmatpush1.bf16.msra.mxu1 %v2123_v40 }
 0x697   :  { %1095 = vmatprep.subr.bf16.mxu1 %v2039_v23 }
 0x75c   :  { %v799_v10 = vpop.f32.mrb[8].mxu1 }
 0x75d   :  { %v807_v11 = vrot.slane %v799_v10, 2  ;;  %v801_v12 = vpop.f32.mrb[9].mxu1  ;;  %v918_v10 = vld [vmem:[#allocation3 + $0x10] sm:$0xc] }
 0x75e   :  { %v803_v14 = vpop.f32.mrb[10].mxu1  ;;  %v816_v20 = vadd.f32 %v2190_v61, %v801_v12 }
 0x75f   :  { %v809_v15 = vadd.f32 %v807_v11, %v755_v13  ;;  %v804_v16 = vpop.f32.mrb[11].mxu1 }
 0x760   :  { %v818_v21 = vrot.slane %v816_v20, 2 }
 0x761   :  { %v1622_v17 = vmul.f32 -1.442695, %v809_v15 }
 0x763   :  { %1791 = vpow2.f32 %v1622_v17 }
 0x76d   :  { %v1792_v18 = vpop.eup %1791 }
 0x76e   :  { %v813_v19 = vadd.f32 1.0, %v1792_v18 }
 0x770   :  { %1793 = vrcp.f32 %v813_v19 }
 0x77a   :  { %v1794_v22 = vpop.eup %1793 }
 0x77b   :  { %v820_v24 = vmul.f32 %v1794_v22, %v818_v21  ;;  %v823_v29 = vsub.f32 1.0, %v1794_v22  ;;  %v831_v35 = vmul.f32 %v1794_v22, %v829_v32  ;;  %v1001_v32 = vld [vmem:[#allocation3 + $0x10] sm:$0x30] }
 0x77d   :  { %v821_v28 = vadd.f32 %v820_v24, %v756_v25 }
 0x77f   :  { %1795 = vtanh.f32 %v821_v28 }
 0x789   :  { %v1796_v23 = vpop.eup %1795 }
 0x78a   :  { %825 = vrot.lane.b32.xlu0 %v1796_v23, %s2426_s7 }
 0x7fc   :  { %v826_v33 = vpop.permute.xlu0 %825 }
 0x7fd   :  { %v828_v36 = vmul.f32 %v826_v33, %v823_v29 }
 0x7ff   :  { %v2248_v37 = vadd.f32 %v831_v35, %v828_v36 }
 0x801   :  { %v842_v41 = vpack.c.bf16 %v2248_v37, %v2248_v37  ;;  %v908_v62 = vrot.slane %v2248_v37, 6 }
 0x803   :  { %v844_v43 = vrot.slane %v842_v41, 3 }
 0x805   :  { %845 = vrot.lane.b32.xlu1 %v844_v43, %s2426_s7 }
 0x877   :  { %v846_v44 = vpop.permute.xlu1 %845 }
 0x878   :  { %1623 = vmatmul.mubr.msk.bf16.vlgmr.msra.gmra.mrb[8].mxu0 %vm58_vm0, %v846_v44 }
 0x879   :  { %1012 = vmatpush1.bf16.msra.mxu0 %v2056_v26  ;;  %1043 = vmatprep.mubr.bf16.mxu0 %v1861_v31 }
 0x87a   :  { %1013 = vmatprep.subr.bf16.mxu0 %v2062_v27 }
 0x87d   :  { %1014 = vmatpush1.bf16.msra.mxu0 %v2072_v30 }
 0x87e   :  { %1015 = vmatprep.subr.bf16.mxu0 %v2097_v34 }
 0x881   :  { %1016 = vmatpush1.bf16.msra.mxu0 %v2112_v38 }
 0x882   :  { %1017 = vmatprep.subr.bf16.mxu0 %v2118_v39 }
 0x885   :  { %1018 = vmatpush1.bf16.msra.mxu0 %v2123_v40 }
 0x94b   :  { %v884_v46 = vpop.f32.mrb[8].mxu0 }
 0x94c   :  { %v891_v47 = vadd.f32 %v884_v46, %v840_v45  ;;  %v886_v48 = vpop.f32.mrb[9].mxu0 }
 0x94d   :  { %v888_v49 = vpop.f32.mrb[10].mxu0  ;;  %v898_v54 = vadd.f32 %v2190_v61, %v886_v48 }
 0x94e   :  { %v1624_v50 = vmul.f32 -1.442695, %v891_v47  ;;  %v889_v51 = vpop.f32.mrb[11].mxu0  ;;  %v1002_v49 = vld [vmem:[#allocation3 + $0x18] sm:$0x30] }
 0x950   :  { %1797 = vpow2.f32 %v1624_v50 }
 0x95a   :  { %v1798_v52 = vpop.eup %1797 }
 0x95b   :  { %v895_v53 = vadd.f32 1.0, %v1798_v52 }
 0x95d   :  { %1799 = vrcp.f32 %v895_v53 }
 0x967   :  { %v1800_v55 = vpop.eup %1799 }
 0x968   :  { %v899_v56 = vmul.f32 %v1800_v55, %v898_v54  ;;  %v902_v60 = vsub.f32 1.0, %v1800_v55  ;;  %v910_v0 = vmul.f32 %v1800_v55, %v908_v62 }
 0x96a   :  { %v900_v58 = vadd.f32 %v899_v56, %v841_v57 }
 0x96c   :  { %1801 = vtanh.f32 %v900_v58 }
 0x976   :  { %v1802_v59 = vpop.eup %1801 }
 0x977   :  { %904 = vrot.lane.b32.xlu0 %v1802_v59, %s2426_s7 }
 0x9e9   :  { %v905_v63 = vpop.permute.xlu0 %904 }
 0x9ea   :  { %v907_v1 = vmul.f32 %v905_v63, %v902_v60 }
 0x9ec   :  { %v2265_v2 = vadd.f32 %v910_v0, %v907_v1 }
 0x9ee   :  { %v920_v3 = vpack.c.bf16 %v2265_v2, %v2265_v2  ;;  %v991_v17 = vrot.slane %v2265_v2, 6 }
 0x9f0   :  { %922 = vrot.lane.b32.xlu1 %v920_v3, %s2426_s7  ;;  %v1085_v3 = vld [vmem:[#allocation3 + $0x10] sm:$0xc0] }
 0xa62   :  { %v923_v4 = vpop.permute.xlu1 %922 }
 0xa63   :  { %1625 = vmatmul.mubr.msk.bf16.vlgmr.msra.gmra.mrb[12].mxu1 %vm58_vm0, %v923_v4 }
 0xa64   :  { %1096 = vmatpush1.bf16.msra.mxu1 %v2056_v26  ;;  %1127 = vmatprep.mubr.bf16.mxu1 %v1861_v31 }
 0xa65   :  { %1097 = vmatprep.subr.bf16.mxu1 %v2062_v27 }
 0xa68   :  { %1098 = vmatpush1.bf16.msra.mxu1 %v2072_v30 }
 0xa69   :  { %1099 = vmatprep.subr.bf16.mxu1 %v2097_v34 }
 0xa6c   :  { %1100 = vmatpush1.bf16.msra.mxu1 %v2112_v38 }
 0xa6d   :  { %1101 = vmatprep.subr.bf16.mxu1 %v2118_v39  ;;  %v919_v39 = vld [vmem:[#allocation3 + $0x18] sm:$0xc] }
 0xa70   :  { %1102 = vmatpush1.bf16.msra.mxu1 %v2123_v40 }
 0xb36   :  { %v961_v6 = vpop.f32.mrb[12].mxu1 }
 0xb37   :  { %v969_v7 = vrot.slane %v961_v6, 6  ;;  %v963_v9 = vpop.f32.mrb[13].mxu1 }
 0xb38   :  { %v965_v11 = vpop.f32.mrb[14].mxu1  ;;  %v978_v30 = vadd.f32 %v2190_v61, %v963_v9 }
 0xb39   :  { %v971_v26 = vadd.f32 %v969_v7, %v918_v10  ;;  %v966_v12 = vpop.f32.mrb[15].mxu1 }
 0xb3a   :  { %v980_v34 = vrot.slane %v978_v30, 6 }
 0xb3b   :  { %v1626_v31 = vmul.f32 -1.442695, %v971_v26 }
 0xb3d   :  { %1803 = vpow2.f32 %v1626_v31 }
 0xb47   :  { %v1804_v27 = vpop.eup %1803 }
 0xb48   :  { %v975_v13 = vadd.f32 1.0, %v1804_v27 }
 0xb4a   :  { %1805 = vrcp.f32 %v975_v13 }
 0xb54   :  { %v1806_v38 = vpop.eup %1805 }
 0xb55   :  { %v982_v14 = vmul.f32 %v1806_v38, %v980_v34  ;;  %v985_v16 = vsub.f32 1.0, %v1806_v38  ;;  %v993_v19 = vmul.f32 %v1806_v38, %v991_v17  ;;  %v1086_v34 = vld [vmem:[#allocation3 + $0x18] sm:$0xc0]  ;;  %v1750_v17 = vld [vmem:[%s2427_s10] sm:$0xff]  }
 0xb57   :  { %v983_v15 = vadd.f32 %v982_v14, %v919_v39 }
 0xb59   :  { %1807 = vtanh.f32 %v983_v15 }
 0xb63   :  { %v1808_v40 = vpop.eup %1807 }
 0xb64   :  { %987 = vrot.lane.b32.xlu0 %v1808_v40, %s2426_s7 }
 0xbd6   :  { %v988_v18 = vpop.permute.xlu0 %987 }
 0xbd7   :  { %v990_v20 = vmul.f32 %v988_v18, %v985_v16  ;;  %v1751_v18 = vld [vmem:[%s2427_s10 + $0x48] sm:$0xff]  }
 0xbd9   :  { %v2282_v21 = vadd.f32 %v993_v19, %v990_v20  ;;  %v1862_v19 = vmov 0.0   ;;  %v1752_v20 = vld [vmem:[%s2427_s10 + $0x80] sm:$0xff]  }
 0xbda   :  { %1687 = vmatprep.subr.bf16.mxu1 %v1862_v19 }
 0xbdb   :  { %v1003_v22 = vpack.c.bf16 %v2282_v21, %v2282_v21  ;;  %v1075_v53 = vrot.slane %v2282_v21, 6 }
 0xbdd   :  { %v1005_v24 = vrot.slane %v1003_v22, 1  ;;  %v1755_v22 = vld [vmem:[%s2427_s10 + $0x88] sm:$0xff]  }
 0xbdf   :  { %1006 = vrot.lane.b32.xlu1 %v1005_v24, %s2426_s7 }
 0xc51   :  { %v1007_v25 = vpop.permute.xlu1 %1006 }
 0xc52   :  { %1627 = vmatmul.mubr.msk.bf16.vlgmr.msra.gmra.mrb[12].mxu0 %vm58_vm0, %v1007_v25  ;;  %v1754_v25 = vld [vmem:[%s2427_s10 + $0x50] sm:$0xff]  }
 0xd25   :  { %v1045_v28 = vpop.f32.mrb[12].mxu0 }
 0xd26   :  { %v1053_v23 = vrot.slane %v1045_v28, 4  ;;  %v1047_v29 = vpop.f32.mrb[13].mxu0  ;;  %v1756_v28 = vld [vmem:[%s2427_s10 + $0x10] sm:$0xff]  }
 0xd27   :  { %v1049_v33 = vpop.f32.mrb[14].mxu0  ;;  %v1062_v45 = vadd.f32 %v2190_v61, %v1047_v29  ;;  %v1757_v29 = vld [vmem:[%s2427_s10 + $0x58] sm:$0xff]  }
 0xd28   :  { %v1055_v35 = vadd.f32 %v1053_v23, %v1001_v32  ;;  %v1050_v36 = vpop.f32.mrb[15].mxu0  ;;  %v1758_v23 = vld [vmem:[%s2427_s10 + $0x90] sm:$0xff]   ;;  %v1759_v32 = vld [vmem:[%s2427_s10 + $0x18] sm:$0xff]  }
 0xd29   :  { %v1064_v46 = vrot.slane %v1062_v45, 4  ;;  %v1761_v33 = vld [vmem:[%s2427_s10 + $0x98] sm:$0xff]   ;;  %v1762_v36 = vld [vmem:[%s2427_s10 + $0x20] sm:$0xff]   ;;  %v1767_v45 = vld [vmem:[%s2427_s10 + $0xa8] sm:$0xff]  }
 0xd2a   :  { %v1628_v41 = vmul.f32 -1.442695, %v1055_v35  ;;  %v1760_v35 = vld [vmem:[%s2427_s10 + $0x60] sm:$0xff]  }
 0xd2c   :  { %1809 = vpow2.f32 %v1628_v41  ;;  %v1764_v41 = vld [vmem:[%s2427_s10 + $0xa0] sm:$0xff]  }
 0xd36   :  { %v1810_v43 = vpop.eup %1809 }
 0xd37   :  { %v1059_v44 = vadd.f32 1.0, %v1810_v43  ;;  %v1763_v43 = vld [vmem:[%s2427_s10 + $0x68] sm:$0xff]  }
 0xd39   :  { %1811 = vrcp.f32 %v1059_v44  ;;  %v1765_v44 = vld [vmem:[%s2427_s10 + $0x28] sm:$0xff]  }
 0xd43   :  { %v1812_v47 = vpop.eup %1811 }
 0xd44   :  { %v1066_v48 = vmul.f32 %v1812_v47, %v1064_v46  ;;  %v1069_v52 = vsub.f32 1.0, %v1812_v47  ;;  %v1077_v55 = vmul.f32 %v1812_v47, %v1075_v53  ;;  %v1766_v46 = vld [vmem:[%s2427_s10 + $0x70] sm:$0xff]  }
 0xd45   :  { %v1768_v47 = vld [vmem:[%s2427_s10 + $0x30] sm:$0xff]  }
 0xd46   :  { %v1067_v50 = vadd.f32 %v1066_v48, %v1002_v49  ;;  %v1769_v48 = vld [vmem:[%s2427_s10 + $0x78] sm:$0xff]   ;;  %v1770_v49 = vld [vmem:[%s2427_s10 + $0xb0] sm:$0xff]  }
 0xd48   :  { %1813 = vtanh.f32 %v1067_v50  ;;  %v1771_v50 = vld [vmem:[%s2427_s10 + $0x38] sm:$0xff]  }
 0xd52   :  { %v1814_v51 = vpop.eup %1813 }
 0xd53   :  { %1071 = vrot.lane.b32.xlu0 %v1814_v51, %s2426_s7 }
 0xdc5   :  { %v1072_v54 = vpop.permute.xlu0 %1071 }
 0xdc6   :  { %v1074_v56 = vmul.f32 %v1072_v54, %v1069_v52  ;;  %v1772_v52 = vld [vmem:[%s2427_s10 + $0xb8] sm:$0xff]  }
 0xdc8   :  { %v1078_v57 = vadd.f32 %v1077_v55, %v1074_v56 }
 0xdca   :  { %v1087_v58 = vpack.c.bf16 %v1078_v57, %v1078_v57  ;;  %v1159_v31 = vrot.slane %v1078_v57, 6 }
 0xdcc   :  { %v1089_v59 = vrot.slane %v1087_v58, 2 }
 0xdce   :  { %1090 = vrot.lane.b32.xlu1 %v1089_v59, %s2426_s7 }
 0xdd2   :  { %580 = vrot.lane.b32.xlu1 %v2194_v8, %s2426_s7 }
 0xdd6   :  { %749 = vrot.lane.b32.xlu1 %v2230_v5, %s2426_s7 }
 0xdda   :  { %913 = vrot.lane.b32.xlu1 %v2265_v2, %s2426_s7 }
 0xdde   :  { %1080 = vrot.lane.b32.xlu1 %v1078_v57, %s2426_s7 }
 0xe40   :  { %v1091_v60 = vpop.permute.xlu1 %1090 }
 0xe41   :  { %1629 = vmatmul.mubr.msk.bf16.vlgmr.msra.gmra.mrb[16].mxu1 %vm58_vm0, %v1091_v60 }
 0xe42   :  { %1688 = vmatpush3.bf16.msra.mxu1 %v1752_v20  ;;  %1703 = vmatprep.mubr.msk.bf16.mxu1 %vm1863_vm5, %v1862_v19 }
 0xe43   :  { %1689 = vmatprep.subr.bf16.mxu1 %v1862_v19 }
 0xe44   :  { %v581_v62 = vpop.permute.xlu1 %580 }
 0xe45   :  { %584 = vst.msk [vmem:[#allocation4] sm:$0x3] %vm583_vm1, %v581_v62  ;;  %585 = vst.msk [vmem:[#allocation5 + $0xe] sm:$0x3] %vm583_vm1, %v581_v62 }
 0xe46   :  { %1690 = vmatpush3.bf16.msra.mxu1 %v1755_v22 }
 0xe47   :  { %1691 = vmatprep.subr.bf16.mxu1 %v1862_v19 }
 0xe48   :  { %v750_v63 = vpop.permute.xlu1 %749 }
 0xe49   :  { %753 = vst.msk [vmem:[#allocation4] sm:$0x30] %vm752_vm2, %v750_v63  ;;  %754 = vst.msk [vmem:[#allocation5 + $0x6] sm:$0x30] %vm752_vm2, %v750_v63 }
 0xe4a   :  { %1692 = vmatpush3.bf16.msra.mxu1 %v1758_v23 }
 0xe4b   :  { %1693 = vmatprep.subr.bf16.mxu1 %v1862_v19 }
 0xe4c   :  { %v914_v8 = vpop.permute.xlu1 %913 }
 0xe4d   :  { %916 = vst.msk [vmem:[#allocation4 + $0x8] sm:$0x3] %vm583_vm1, %v914_v8  ;;  %917 = vst.msk [vmem:[#allocation5 + $0x6] sm:$0x3] %vm583_vm1, %v914_v8 }
 0xe4e   :  { %1694 = vmatpush3.bf16.msra.mxu1 %v1761_v33 }
 0xe4f   :  { %1695 = vmatprep.subr.bf16.mxu1 %v1862_v19 }
 0xe50   :  { %v1081_v5 = vpop.permute.xlu1 %1080 }
 0xe51   :  { %1083 = vst.msk [vmem:[#allocation4 + $0x8] sm:$0x30] %vm752_vm2, %v1081_v5  ;;  %1084 = vst.msk [vmem:[#allocation5 - $0x2] sm:$0x30] %vm752_vm2, %v1081_v5 }
 0xe52   :  { %1696 = vmatpush3.bf16.msra.mxu1 %v1764_v41 }
 0xe53   :  { %1697 = vmatprep.subr.bf16.mxu1 %v1862_v19 }
 0xe56   :  { %1698 = vmatpush3.bf16.msra.mxu1 %v1767_v45 }
 0xe57   :  { %1699 = vmatprep.subr.bf16.mxu1 %v1862_v19 }
 0xe5a   :  { %1700 = vmatpush3.bf16.msra.mxu1 %v1770_v49 }
 0xe5b   :  { %1701 = vmatprep.subr.bf16.mxu1 %v1862_v19 }
 0xe5e   :  { %1702 = vmatpush3.bf16.msra.mxu1 %v1772_v52 }
 0xf14   :  { %v1129_v0 = vpop.f32.mrb[16].mxu1 }
 0xf15   :  { %v1137_v1 = vrot.slane %v1129_v0, 2  ;;  %v1131_v2 = vpop.f32.mrb[17].mxu1 }
 0xf16   :  { %v1133_v4 = vpop.f32.mrb[18].mxu1  ;;  %v1146_v26 = vadd.f32 %v2190_v61, %v1131_v2 }
 0xf17   :  { %v1139_v6 = vadd.f32 %v1137_v1, %v1085_v3  ;;  %v1134_v7 = vpop.f32.mrb[19].mxu1 }
 0xf18   :  { %v1148_v12 = vrot.slane %v1146_v26, 2  ;;  %v1631_v7 = vld [vmem:[%s2428_s1] ss:$0 sm:$0xff] }
 0xf19   :  { %v1630_v9 = vmul.f32 -1.442695, %v1139_v6 }
 0xf1b   :  { %1815 = vpow2.f32 %v1630_v9 }
 0xf25   :  { %v1816_v10 = vpop.eup %1815 }
 0xf26   :  { %v1143_v11 = vadd.f32 1.0, %v1816_v10 }
 0xf28   :  { %1817 = vrcp.f32 %v1143_v11 }
 0xf32   :  { %v1818_v27 = vpop.eup %1817 }
 0xf33   :  { %v1150_v13 = vmul.f32 %v1818_v27, %v1148_v12  ;;  %v1161_v30 = vmul.f32 %v1818_v27, %v1159_v31  ;;  %v1153_v61 = vsub.f32 1.0, %v1818_v27 }
 0xf35   :  { %v1151_v38 = vadd.f32 %v1150_v13, %v1086_v34 }
 0xf37   :  { %1819 = vtanh.f32 %v1151_v38 }
 0xf41   :  { %v1820_v14 = vpop.eup %1819 }
 0xf42   :  { %1155 = vrot.lane.b32.xlu0 %v1820_v14, %s2426_s7 }
 0xf46   :  { %664 = vrot.lane.b32.xlu0 %v2212_v42, %s2426_s7 }
 0xf4a   :  { %834 = vrot.lane.b32.xlu0 %v2248_v37, %s2426_s7  ;;  %v1749_v37 = vld [vmem:[%s2427_s10 + $0x40] sm:$0xff]  }
 0xf4b   :  { %1656 = vmatprep.subr.bf16.mxu0 %v1749_v37 }
 0xf4c   :  { %1657 = vmatpush3.bf16.msra.mxu0 %v1750_v17 }
 0xf4d   :  { %1658 = vmatprep.subr.bf16.mxu0 %v1751_v18 }
 0xf4e   :  { %996 = vrot.lane.b32.xlu0 %v2282_v21, %s2426_s7  ;;  %v1753_v21 = vld [vmem:[%s2427_s10 + $0x8] sm:$0xff]  }
 0xf50   :  { %1659 = vmatpush3.bf16.msra.mxu0 %v1753_v21 }
 0xf51   :  { %1660 = vmatprep.subr.bf16.mxu0 %v1754_v25 }
 0xf54   :  { %1661 = vmatpush3.bf16.msra.mxu0 %v1756_v28 }
 0xf55   :  { %1662 = vmatprep.subr.bf16.mxu0 %v1757_v29 }
 0xf58   :  { %1663 = vmatpush3.bf16.msra.mxu0 %v1759_v32 }
 0xf59   :  { %1664 = vmatprep.subr.bf16.mxu0 %v1760_v35 }
 0xf5c   :  { %1665 = vmatpush3.bf16.msra.mxu0 %v1762_v36 }
 0xf5d   :  { %1666 = vmatprep.subr.bf16.mxu0 %v1763_v43 }
 0xf60   :  { %1667 = vmatpush3.bf16.msra.mxu0 %v1765_v44 }
 0xf61   :  { %1668 = vmatprep.subr.bf16.mxu0 %v1766_v46 }
 0xf64   :  { %1669 = vmatpush3.bf16.msra.mxu0 %v1768_v47 }
 0xf65   :  { %1670 = vmatprep.subr.bf16.mxu0 %v1769_v48 }
 0xf68   :  { %1671 = vmatpush3.bf16.msra.mxu0 %v1771_v50 }
 0xfb4   :  { %v1156_v39 = vpop.permute.xlu0 %1155 }
 0xfb5   :  { %v1158_v15 = vmul.f32 %v1156_v39, %v1153_v61 }
 0xfb7   :  { %v1162_v40 = vadd.f32 %v1161_v30, %v1158_v15 }
 0xfb8   :  { %v665_v16 = vpop.permute.xlu0 %664 }
 0xfb9   :  { %668 = vst.msk [vmem:[#allocation4] sm:$0xc] %vm667_vm3, %v665_v16  ;;  %669 = vst.msk [vmem:[#allocation5 + $0xa] sm:$0xc] %vm667_vm3, %v665_v16  ;;  %1164 = vrot.lane.b32.xlu0 %v1162_v40, %s2426_s7 }
 0xfbc   :  { %v835_v42 = vpop.permute.xlu0 %834 }
 0xfbd   :  { %838 = vst.msk [vmem:[#allocation4] sm:$0xc0] %vm837_vm4, %v835_v42  ;;  %839 = vst.msk [vmem:[#allocation5 + $0x2] sm:$0xc0] %vm837_vm4, %v835_v42 }
 0xfc0   :  { %v997_v24 = vpop.permute.xlu0 %996 }
 0xfc1   :  { %999 = vst.msk [vmem:[#allocation4 + $0x8] sm:$0xc] %vm667_vm3, %v997_v24  ;;  %1000 = vst.msk [vmem:[#allocation5 + $0x2] sm:$0xc] %vm667_vm3, %v997_v24 }
 0xfc4   :  { %v1173_v54 = vld [vmem:[#allocation5 + $0x8] sm:$0xff]  ;;  %v1169_v59 = vld [vmem:[#allocation4] sm:$0xff] }
0x102b   :  { %v1165_v51 = vpop.permute.xlu0 %1164 }
0x102c   :  { %1167 = vst.msk [vmem:[#allocation4 + $0x8] sm:$0xc0] %vm837_vm4, %v1165_v51  ;;  %1168 = vst.msk [vmem:[#allocation5 - $0x6] sm:$0xc0] %vm837_vm4, %v1165_v51 }
0x1033   :  { %v1172_v53 = vld [vmem:[#allocation5] sm:$0xff]  ;;  %v1170_v58 = vld [vmem:[#allocation4 + $0x8] sm:$0xff] }
0x1034   :  { %v1174_v55 = vpack.c.bf16 %v1173_v54, %v1172_v53  ;;  %v1171_v60 = vpack.c.bf16 %v1170_v58, %v1169_v59 }
0x1036   :  { %1176 = vrot.lane.b32.xlu0 %v1174_v55, %s2426_s7  ;;  %v1180_v56 = vrot.slane %v1174_v55, 1  ;;  %v1184_v57 = vrot.slane %v1174_v55, 2  ;;  %v1179_v63 = vrot.slane %v1171_v60, 1  ;;  %v1183_v1 = vrot.slane %v1171_v60, 2 }
0x1038   :  { %1181 = vrot.lane.b32.xlu1 %v1180_v56, %s2426_s7 }
0x103c   :  { %1185 = vrot.lane.b32.xlu1 %v1184_v57, %s2426_s7 }
0x10a8   :  { %v1177_v62 = vpop.permute.xlu0 %1176 }
0x10a9   :  { %v1189_v0 = vsel %vm58_vm0, %v1171_v60, %v1177_v62 }
0x10aa   :  { %v1182_v8 = vpop.permute.xlu1 %1181 }
0x10ab   :  { %v1193_v5 = vsel %vm58_vm0, %v1179_v63, %v1182_v8 }
0x10ac   :  { %1430 = vmatprep.mubr.bf16.mxu0 %v1193_v5 }
0x10ad   :  { %1431 = vmatmul.mubr.bf16.vlgmr.msra.gmra.mrb[16].mxu0 %v1189_v0 }
0x10ae   :  { %v1186_v2 = vpop.permute.xlu1 %1185 }
0x10af   :  { %v1197_v3 = vsel %vm58_vm0, %v1183_v1, %v1186_v2 }
0x10b0   :  { %1704 = vmatmul.mubr.bf16.vlgmr.msra.gmra.mrb[20].mxu1 %v1197_v3 }
0x1180   :  { %v1672_v4 = vpop.f32.mrb[16].mxu0 }
0x1181   :  { %v1673_v6 = vpop.f32.mrb[17].mxu0 }
0x1182   :  { %v1674_v9 = vadd.f32 %v1673_v6, %v1672_v4  ;;  %v1675_v10 = vpop.f32.mrb[18].mxu0 }
0x1183   :  { %v1676_v11 = vpop.f32.mrb[19].mxu0  ;;  %v1473_v26 = vpop.f32.mrb[20].mxu1 }
0x1184   :  { %v1677_v12 = vadd.f32 %v1676_v11, %v1675_v10  ;;  %v1433_v31 = vadd.f32 %v1674_v9, %v1631_v7  ;;  %v1705_v27 = vpop.f32.mrb[21].mxu1 }
0x1185   :  { %v1476_v13 = vpop.f32.mrb[22].mxu1 }
0x1186   :  { %v1474_v30 = vadd.f32 %v1473_v26, %v1433_v31  ;;  %v1436_v34 = vadd.f32 %v1677_v12, %v1631_v7  ;;  %v1706_v38 = vpop.f32.mrb[23].mxu1 }
0x1188   :  { %v1481_v14 = vrot.slane %v1474_v30, 2  ;;  %v1477_v61 = vadd.f32 %v1476_v13, %v1436_v34  ;;  %v1484_v15 = vrot.slane %v1474_v30, 4  ;;  %v1487_v16 = vrot.slane %v1474_v30, 6 }
0x118a   :  { %v1483_v39 = vmax.f32 %v1474_v30, %v1481_v14  ;;  %v1492_v17 = vrot.slane %v1477_v61, 2 }
0x118c   :  { %v1486_v40 = vmax.f32 %v1483_v39, %v1484_v15 }
0x118e   :  { %v1489_v42 = vmax.f32 %v1486_v40, %v1487_v16 }
0x1190   :  { %v1490_v37 = vmax.f32 %v1489_v42, %v1477_v61 }
0x1192   :  { %v1494_v18 = vmax.f32 %v1490_v37, %v1492_v17 }
0x1194   :  { %v1495_v19 = vmax.f32 %v1494_v18, 0.0 }
0x1196   :  { %1497 = vst.msk [vmem:[#allocation9] sm:$0x3] %vm1496_vm6, %v1495_v19 }
0x1197   :  { %1844 = shalt.err (!%p1841_p9)
}
0x1198   :  { %s2429_s4 = sld [smem:[#allocation14_spill]] }
0x119e   :  { %s1845_s24 = scalar_lea.hbm %s2429_s4, 32 }
0x119f   :  { %p1846_p10 = scmp.ne.s32.totalorder %s2429_s4, %s1845_s24  ;;  %p1849_p11 = scmp.lt.u32.totalorder %s1845_s24, %s2429_s4 }
0x11a1   :  { %p1851_p12 = pnand %p1849_p11, %p1846_p10 }
0x11a3   :  { %1854 = shalt.err (!%p1851_p12)
}
0x11a4   :  { %1507 = dma.vmem_to_hbm [thread:$0]  %s1505_s13, 32, %s2429_s4, [#allocation7]  }
0x11a5   :  { %1857 = dma.done.wait [#allocation7], 32  }
0x11a6   :  { %1858 = vsyncadd [#allocation7], 4294967264 }
0x11a7   :  { %1511 = vsyncpa [#allocation7], 1 }
0x11a8   :  { %1512 = vsyncpa [#allocation8], 1 }

</bundles_post_ra>
